<compile_context>
chip_gen: v5e
topology: v5e:2x2
jax: 0.10.0
libtpu: 0.0.40
codegen_flags: <defaults>
</compile_context>

<pallas_src>
import math
import numpy as np
import jax
import jax.numpy as jnp
from jax.experimental import pallas as pl
from jax.experimental.pallas import tpu as pltpu

D_MODEL = 128
N_HEAD = 4
HEAD_DIM = D_MODEL // N_HEAD
D_FF = 4 * D_MODEL
SEQ = 8
LN_EPS = 1e-5
GELU_C = math.sqrt(2.0 / math.pi)
ATTN_SCALE = 1.0 / math.sqrt(HEAD_DIM)


def _layernorm(x, gamma, beta):
    mu = jnp.mean(x, axis=-1, keepdims=True)
    xc = x - mu
    var = jnp.mean(xc * xc, axis=-1, keepdims=True)
    return xc * jax.lax.rsqrt(var + LN_EPS) * gamma + beta


def block_kernel(x_ref,
                 g1_ref, b1_ref, wqkv_ref, bqkv_ref, wproj_ref, bproj_ref,
                 g2_ref, b2_ref, wfc_ref, bfc_ref, wfp_ref, bfp_ref,
                 out_ref):
    bt, T, C = x_ref.shape
    x = x_ref[...].astype(jnp.float32).reshape(bt * T, C)          # (bt*T, C) f32

    # ---- ln_1 + fused QKV projection: one (bt*T,128)@(128,384) MXU matmul ----
    xn1 = _layernorm(x, g1_ref[...], b1_ref[...])
    qkv = jnp.dot(xn1.astype(jnp.bfloat16), wqkv_ref[...],
                  preferred_element_type=jnp.float32) + bqkv_ref[...]      # (bt*T, 3C)
    qkv_b = qkv.reshape(bt, T, 3 * C).astype(jnp.bfloat16)

    # ---- multi-head attention, all heads batched along the leading axis ------
    # The module never applies `mask`, so softmax runs over the full sequence.
    # TODO(synk): attn/resid/mlp dropout is treated as identity (inference mode).
    def stack_heads(base):                                         # -> (N_HEAD*bt, T, hd)
        return jnp.concatenate(
            [qkv_b[:, :, base + h * HEAD_DIM: base + (h + 1) * HEAD_DIM]
             for h in range(N_HEAD)], axis=0)

    q = stack_heads(0)
    k = stack_heads(C)
    v = stack_heads(2 * C)
    att = jnp.einsum('bqd,bkd->bqk', q, k,
                     preferred_element_type=jnp.float32) * ATTN_SCALE      # (nh*bt, T, T)
    att = att - jnp.max(att, axis=-1, keepdims=True)
    p = jnp.exp(att)
    p = p / jnp.sum(p, axis=-1, keepdims=True)                     # exact divide
    yh = jnp.einsum('bqk,bkd->bqd', p.astype(jnp.bfloat16), v,
                    preferred_element_type=jnp.float32)            # (nh*bt, T, hd)

    # put each head back onto its 32-lane slot -> (bt*T, 128), then a single
    # full-depth K=128 c_proj matmul (replaces the 4 accumulating K=32 dots).
    y = jnp.concatenate([yh[h * bt:(h + 1) * bt] for h in range(N_HEAD)], axis=-1)
    y = jnp.dot(y.reshape(bt * T, C).astype(jnp.bfloat16), wproj_ref[...],
                preferred_element_type=jnp.float32)
    x1 = x + y + bproj_ref[...]                                    # residual 1

    # ---- ln_2 + MLP: c_fc -> NewGELU -> c_proj --------------------------------
    xn2 = _layernorm(x1, g2_ref[...], b2_ref[...])
    hpre = jnp.dot(xn2.astype(jnp.bfloat16), wfc_ref[...],
                   preferred_element_type=jnp.float32) + bfc_ref[...]      # (bt*T, 4C)
    hact = 0.5 * hpre * (1.0 + jnp.tanh(GELU_C * (hpre + 0.044715 * hpre * hpre * hpre)))
    mlp = jnp.dot(hact.astype(jnp.bfloat16), wfp_ref[...],
                  preferred_element_type=jnp.float32) + bfp_ref[...]
    out = x1 + mlp                                                 # residual 2
    out_ref[...] = out.reshape(bt, T, C).astype(out_ref.dtype)


def block_forward(x, params, *, b_tile=128):
    """x: (B, T, D_MODEL) float32. Returns Block.forward(x) as (B, T, D_MODEL) f32."""
    B, T, C = x.shape
    assert T == SEQ and C == D_MODEL
    bt = min(b_tile, B)
    num_tiles = -(-B // bt)
    Bp = num_tiles * bt

    f32, bf16 = jnp.float32, jnp.bfloat16
    x_in = x.astype(bf16)                                          # bf16 activation I/O
    if Bp != B:                                                    # pad batch to tile
        x_in = jnp.concatenate([x_in, jnp.zeros((Bp - B, T, C), bf16)], axis=0)

    g1 = params['ln1_g'].reshape(1, C).astype(f32)
    b1 = params['ln1_b'].reshape(1, C).astype(f32)
    g2 = params['ln2_g'].reshape(1, C).astype(f32)
    b2 = params['ln2_b'].reshape(1, C).astype(f32)
    wqkv = params['c_attn_w'].T.astype(bf16)                       # (C, 3C)
    bqkv = params['c_attn_b'].reshape(1, 3 * C).astype(f32)
    wproj = params['c_proj_w'].T.astype(bf16)                      # (C, C)
    bproj = params['c_proj_b'].reshape(1, C).astype(f32)
    wfc = params['c_fc_w'].T.astype(bf16)                          # (C, 4C)
    bfc = params['c_fc_b'].reshape(1, 4 * C).astype(f32)
    wfp = params['mlp_proj_w'].T.astype(bf16)                      # (4C, C)
    bfp = params['mlp_proj_b'].reshape(1, C).astype(f32)

    def full(shape):                                               # grid-invariant weight
        n = len(shape)
        return pl.BlockSpec(shape, lambda i, _n=n: (0,) * _n)

    io_spec = pl.BlockSpec((bt, T, C), lambda i: (i, 0, 0))
    grid_spec = pltpu.PrefetchScalarGridSpec(
        num_scalar_prefetch=0,
        grid=(num_tiles,),
        in_specs=[
            io_spec,
            full((1, C)), full((1, C)),
            full((C, 3 * C)), full((1, 3 * C)),
            full((C, C)), full((1, C)),
            full((1, C)), full((1, C)),
            full((C, 4 * C)), full((1, 4 * C)),
            full((4 * C, C)), full((1, C)),
        ],
        out_specs=io_spec,
    )

    out = pl.pallas_call(
        block_kernel,
        out_shape=jax.ShapeDtypeStruct((Bp, T, C), bf16),
        grid_spec=grid_spec,
        compiler_params=pltpu.CompilerParams(
            dimension_semantics=("parallel",),
            vmem_limit_bytes=64 * 1024 * 1024,
        ),
    )(x_in, g1, b1, wqkv, bqkv, wproj, bproj, g2, b2, wfc, bfc, wfp, bfp)

    return out[:B].astype(f32)


def init_params(key, d_model=D_MODEL):
    ks = jax.random.split(key, 12)
    std = 0.02

    def w(k, shape):
        return std * jax.random.normal(k, shape, jnp.float32)

    def b(k, shape):
        return 0.01 * jax.random.normal(k, shape, jnp.float32)

    return {
        'ln1_g': 1.0 + 0.1 * jax.random.normal(ks[0], (d_model,), jnp.float32),
        'ln1_b': b(ks[1], (d_model,)),
        'c_attn_w': w(ks[2], (3 * d_model, d_model)),
        'c_attn_b': b(ks[3], (3 * d_model,)),
        'c_proj_w': w(ks[4], (d_model, d_model)),
        'c_proj_b': b(ks[5], (d_model,)),
        'ln2_g': 1.0 + 0.1 * jax.random.normal(ks[6], (d_model,), jnp.float32),
        'ln2_b': b(ks[7], (d_model,)),
        'c_fc_w': w(ks[8], (4 * d_model, d_model)),
        'c_fc_b': b(ks[9], (4 * d_model,)),
        'mlp_proj_w': w(ks[10], (d_model, 4 * d_model)),
        'mlp_proj_b': b(ks[11], (d_model,)),
    }


def ref_forward(x, params):
    """Pure-JAX f32 mirror of the PyTorch Block (dropout = identity, no mask)."""
    def ln(t, g, b):
        mu = t.mean(-1, keepdims=True)
        var = ((t - mu) ** 2).mean(-1, keepdims=True)
        return (t - mu) / jnp.sqrt(var + LN_EPS) * g + b

    B, T, C = x.shape
    h1 = ln(x, params['ln1_g'], params['ln1_b'])
    qkv = h1 @ params['c_attn_w'].T + params['c_attn_b']
    q, k, v = jnp.split(qkv, 3, axis=-1)

    def heads(t):
        return t.reshape(B, T, N_HEAD, HEAD_DIM).transpose(0, 2, 1, 3)

    q, k, v = heads(q), heads(k), heads(v)
    att = (q @ jnp.swapaxes(k, -2, -1)) * ATTN_SCALE
    att = jax.nn.softmax(att, axis=-1)
    y = (att @ v).transpose(0, 2, 1, 3).reshape(B, T, C)
    y = y @ params['c_proj_w'].T + params['c_proj_b']
    x = x + y
    h2 = ln(x, params['ln2_g'], params['ln2_b'])
    f = h2 @ params['c_fc_w'].T + params['c_fc_b']
    f = 0.5 * f * (1.0 + jnp.tanh(GELU_C * (f + 0.044715 * f ** 3)))
    f = f @ params['mlp_proj_w'].T + params['mlp_proj_b']
    return x + f


if __name__ == "__main__":
    key = jax.random.PRNGKey(0)
    kx, kp = jax.random.split(key)

    B, T = 2, SEQ
    x = jax.random.normal(kx, (B, T, D_MODEL), jnp.float32)
    params = init_params(kp)

    out = block_forward(x, params)
    jax.block_until_ready(out)

    ref = ref_forward(x, params)
    assert out.shape == (B, T, D_MODEL)
    err = float(np.max(np.abs(np.asarray(out) - np.asarray(ref))))
    assert np.allclose(np.asarray(out), np.asarray(ref), rtol=2e-2, atol=2e-2), err
    print("KERNEL_OK")
</pallas_src>

<mosaic_0001>
module attributes {stable_mosaic.version = 11 : i64} {
  func.func @block_kernel(%arg0: i32, %arg1: memref<2x8x128xbf16, #tpu.memory_space<vmem>>, %arg2: memref<1x128xf32, #tpu.memory_space<vmem>>, %arg3: memref<1x128xf32, #tpu.memory_space<vmem>>, %arg4: memref<128x384xbf16, #tpu.memory_space<vmem>>, %arg5: memref<1x384xf32, #tpu.memory_space<vmem>>, %arg6: memref<128x128xbf16, #tpu.memory_space<vmem>>, %arg7: memref<1x128xf32, #tpu.memory_space<vmem>>, %arg8: memref<1x128xf32, #tpu.memory_space<vmem>>, %arg9: memref<1x128xf32, #tpu.memory_space<vmem>>, %arg10: memref<128x512xbf16, #tpu.memory_space<vmem>>, %arg11: memref<1x512xf32, #tpu.memory_space<vmem>>, %arg12: memref<512x128xbf16, #tpu.memory_space<vmem>>, %arg13: memref<1x128xf32, #tpu.memory_space<vmem>>, %arg14: memref<2x8x128xbf16, #tpu.memory_space<vmem>>) attributes {dimension_semantics = [#tpu.dimension_semantics<parallel>], iteration_bounds = array<i64: 1>, scalar_prefetch = 0 : i64, scratch_operands = 0 : i64, tpu.core_type = #tpu.core_type<tc>, window_params = [{transform_indices = @transform_0, window_bounds = array<i64: 2, 8, 128>}, {pipeline_mode = #tpu.pipeline_mode<synchronous>, transform_indices = @transform_1, window_bounds = array<i64: 1, 128>}, {pipeline_mode = #tpu.pipeline_mode<synchronous>, transform_indices = @transform_2, window_bounds = array<i64: 1, 128>}, {pipeline_mode = #tpu.pipeline_mode<synchronous>, transform_indices = @transform_3, window_bounds = array<i64: 128, 384>}, {pipeline_mode = #tpu.pipeline_mode<synchronous>, transform_indices = @transform_4, window_bounds = array<i64: 1, 384>}, {pipeline_mode = #tpu.pipeline_mode<synchronous>, transform_indices = @transform_5, window_bounds = array<i64: 128, 128>}, {pipeline_mode = #tpu.pipeline_mode<synchronous>, transform_indices = @transform_6, window_bounds = array<i64: 1, 128>}, {pipeline_mode = #tpu.pipeline_mode<synchronous>, transform_indices = @transform_7, window_bounds = array<i64: 1, 128>}, {pipeline_mode = #tpu.pipeline_mode<synchronous>, transform_indices = @transform_8, window_bounds = array<i64: 1, 128>}, {pipeline_mode = #tpu.pipeline_mode<synchronous>, transform_indices = @transform_9, window_bounds = array<i64: 128, 512>}, {pipeline_mode = #tpu.pipeline_mode<synchronous>, transform_indices = @transform_10, window_bounds = array<i64: 1, 512>}, {pipeline_mode = #tpu.pipeline_mode<synchronous>, transform_indices = @transform_11, window_bounds = array<i64: 512, 128>}, {pipeline_mode = #tpu.pipeline_mode<synchronous>, transform_indices = @transform_12, window_bounds = array<i64: 1, 128>}, {transform_indices = @transform_13, window_bounds = array<i64: 2, 8, 128>}]} {
    %c0 = arith.constant 0 : index
    %c0_0 = arith.constant 0 : index
    %c0_1 = arith.constant 0 : index
    %0 = vector.load %arg1[%c0, %c0_0, %c0_1] : memref<2x8x128xbf16, #tpu.memory_space<vmem>>, vector<2x8x128xbf16>
    %1 = arith.extf %0 : vector<2x8x128xbf16> to vector<2x8x128xf32>
    %2 = vector.shape_cast %1 : vector<2x8x128xf32> to vector<16x128xf32>
    %c0_2 = arith.constant 0 : index
    %c0_3 = arith.constant 0 : index
    %3 = vector.load %arg2[%c0_2, %c0_3] : memref<1x128xf32, #tpu.memory_space<vmem>>, vector<1x128xf32>
    %c0_4 = arith.constant 0 : index
    %c0_5 = arith.constant 0 : index
    %4 = vector.load %arg3[%c0_4, %c0_5] : memref<1x128xf32, #tpu.memory_space<vmem>>, vector<1x128xf32>
    %cst = arith.constant dense<0.000000e+00> : vector<16xf32>
    %5 = vector.multi_reduction <add>, %2, %cst [1] : vector<16x128xf32> to vector<16xf32>
    %6 = vector.shape_cast %5 : vector<16xf32> to vector<16x1xf32>
    %cst_6 = arith.constant 1.280000e+02 : f32
    %7 = vector.broadcast %cst_6 : f32 to vector<16x1xf32>
    %8 = arith.divf %6, %7 : vector<16x1xf32>
    %9 = vector.broadcast %8 : vector<16x1xf32> to vector<16x128xf32>
    %10 = arith.subf %2, %9 : vector<16x128xf32>
    %11 = arith.mulf %10, %10 : vector<16x128xf32>
    %cst_7 = arith.constant dense<0.000000e+00> : vector<16xf32>
    %12 = vector.multi_reduction <add>, %11, %cst_7 [1] : vector<16x128xf32> to vector<16xf32>
    %13 = vector.shape_cast %12 : vector<16xf32> to vector<16x1xf32>
    %cst_8 = arith.constant 1.280000e+02 : f32
    %14 = vector.broadcast %cst_8 : f32 to vector<16x1xf32>
    %15 = arith.divf %13, %14 : vector<16x1xf32>
    %cst_9 = arith.constant 9.99999974E-6 : f32
    %16 = vector.broadcast %cst_9 : f32 to vector<16x1xf32>
    %17 = arith.addf %15, %16 : vector<16x1xf32>
    %18 = math.rsqrt %17 : vector<16x1xf32>
    %19 = vector.broadcast %18 : vector<16x1xf32> to vector<16x128xf32>
    %20 = arith.mulf %10, %19 : vector<16x128xf32>
    %21 = vector.broadcast %3 : vector<1x128xf32> to vector<16x128xf32>
    %22 = arith.mulf %20, %21 : vector<16x128xf32>
    %23 = vector.broadcast %4 : vector<1x128xf32> to vector<16x128xf32>
    %24 = arith.addf %22, %23 : vector<16x128xf32>
    %25 = arith.truncf %24 : vector<16x128xf32> to vector<16x128xbf16>
    %c0_10 = arith.constant 0 : index
    %c0_11 = arith.constant 0 : index
    %26 = vector.load %arg4[%c0_10, %c0_11] : memref<128x384xbf16, #tpu.memory_space<vmem>>, vector<128x384xbf16>
    %cst_12 = arith.constant dense<0.000000e+00> : vector<16x384xf32>
    %27 = tpu.matmul %25, %26, %cst_12 {dimension_numbers = #tpu.dot_dimension_numbers<[1], [0], [0], [1], [0, 0, 1, 1], [], []>} : vector<16x128xbf16>, vector<128x384xbf16>, vector<16x384xf32> -> vector<16x384xf32>
    %c0_13 = arith.constant 0 : index
    %c0_14 = arith.constant 0 : index
    %28 = vector.load %arg5[%c0_13, %c0_14] : memref<1x384xf32, #tpu.memory_space<vmem>>, vector<1x384xf32>
    %29 = vector.broadcast %28 : vector<1x384xf32> to vector<16x384xf32>
    %30 = arith.addf %27, %29 : vector<16x384xf32>
    %31 = vector.shape_cast %30 : vector<16x384xf32> to vector<2x8x384xf32>
    %32 = arith.truncf %31 : vector<2x8x384xf32> to vector<2x8x384xbf16>
    %33 = vector.extract_strided_slice %32 {offsets = [0, 0, 0], sizes = [2, 8, 32], strides = [1, 1, 1]} : vector<2x8x384xbf16> to vector<2x8x32xbf16>
    %34 = vector.extract_strided_slice %32 {offsets = [0, 0, 32], sizes = [2, 8, 32], strides = [1, 1, 1]} : vector<2x8x384xbf16> to vector<2x8x32xbf16>
    %35 = vector.extract_strided_slice %32 {offsets = [0, 0, 64], sizes = [2, 8, 32], strides = [1, 1, 1]} : vector<2x8x384xbf16> to vector<2x8x32xbf16>
    %36 = vector.extract_strided_slice %32 {offsets = [0, 0, 96], sizes = [2, 8, 32], strides = [1, 1, 1]} : vector<2x8x384xbf16> to vector<2x8x32xbf16>
    %37 = tpu.concatenate %33, %34, %35, %36 in 0 : vector<2x8x32xbf16>, vector<2x8x32xbf16>, vector<2x8x32xbf16>, vector<2x8x32xbf16> -> vector<8x8x32xbf16>
    %38 = vector.extract_strided_slice %32 {offsets = [0, 0, 128], sizes = [2, 8, 32], strides = [1, 1, 1]} : vector<2x8x384xbf16> to vector<2x8x32xbf16>
    %39 = vector.extract_strided_slice %32 {offsets = [0, 0, 160], sizes = [2, 8, 32], strides = [1, 1, 1]} : vector<2x8x384xbf16> to vector<2x8x32xbf16>
    %40 = vector.extract_strided_slice %32 {offsets = [0, 0, 192], sizes = [2, 8, 32], strides = [1, 1, 1]} : vector<2x8x384xbf16> to vector<2x8x32xbf16>
    %41 = vector.extract_strided_slice %32 {offsets = [0, 0, 224], sizes = [2, 8, 32], strides = [1, 1, 1]} : vector<2x8x384xbf16> to vector<2x8x32xbf16>
    %42 = tpu.concatenate %38, %39, %40, %41 in 0 : vector<2x8x32xbf16>, vector<2x8x32xbf16>, vector<2x8x32xbf16>, vector<2x8x32xbf16> -> vector<8x8x32xbf16>
    %43 = vector.extract_strided_slice %32 {offsets = [0, 0, 256], sizes = [2, 8, 32], strides = [1, 1, 1]} : vector<2x8x384xbf16> to vector<2x8x32xbf16>
    %44 = vector.extract_strided_slice %32 {offsets = [0, 0, 288], sizes = [2, 8, 32], strides = [1, 1, 1]} : vector<2x8x384xbf16> to vector<2x8x32xbf16>
    %45 = vector.extract_strided_slice %32 {offsets = [0, 0, 320], sizes = [2, 8, 32], strides = [1, 1, 1]} : vector<2x8x384xbf16> to vector<2x8x32xbf16>
    %46 = vector.extract_strided_slice %32 {offsets = [0, 0, 352], sizes = [2, 8, 32], strides = [1, 1, 1]} : vector<2x8x384xbf16> to vector<2x8x32xbf16>
    %47 = tpu.concatenate %43, %44, %45, %46 in 0 : vector<2x8x32xbf16>, vector<2x8x32xbf16>, vector<2x8x32xbf16>, vector<2x8x32xbf16> -> vector<8x8x32xbf16>
    "tpu.trace_start"() <{level = 10 : i32, message = "bqd,bkd->bqk"}> : () -> ()
    %cst_15 = arith.constant dense<0.000000e+00> : vector<8x8x8xf32>
    %48 = tpu.matmul %37, %42, %cst_15 {dimension_numbers = #tpu.dot_dimension_numbers<[2], [2], [1], [1], [0, 0, 0, 1, 1, 1], [0], [0]>} : vector<8x8x32xbf16>, vector<8x8x32xbf16>, vector<8x8x8xf32> -> vector<8x8x8xf32>
    "tpu.trace_stop"() : () -> ()
    %cst_16 = arith.constant 0.176776692 : f32
    %49 = vector.broadcast %cst_16 : f32 to vector<8x8x8xf32>
    %50 = arith.mulf %48, %49 : vector<8x8x8xf32>
    %cst_17 = arith.constant dense<0xFF800000> : vector<8x8xf32>
    %51 = vector.multi_reduction <maximumf>, %50, %cst_17 [2] : vector<8x8x8xf32> to vector<8x8xf32>
    %52 = vector.shape_cast %51 : vector<8x8xf32> to vector<8x8x1xf32>
    %53 = vector.broadcast %52 : vector<8x8x1xf32> to vector<8x8x8xf32>
    %54 = arith.subf %50, %53 : vector<8x8x8xf32>
    %55 = math.exp %54 : vector<8x8x8xf32>
    %cst_18 = arith.constant dense<0.000000e+00> : vector<8x8xf32>
    %56 = vector.multi_reduction <add>, %55, %cst_18 [2] : vector<8x8x8xf32> to vector<8x8xf32>
    %57 = vector.shape_cast %56 : vector<8x8xf32> to vector<8x8x1xf32>
    %58 = vector.broadcast %57 : vector<8x8x1xf32> to vector<8x8x8xf32>
    %59 = arith.divf %55, %58 : vector<8x8x8xf32>
    %60 = arith.truncf %59 : vector<8x8x8xf32> to vector<8x8x8xbf16>
    "tpu.trace_start"() <{level = 10 : i32, message = "bqk,bkd->bqd"}> : () -> ()
    %cst_19 = arith.constant dense<0.000000e+00> : vector<8x8x32xf32>
    %61 = tpu.matmul %60, %47, %cst_19 {dimension_numbers = #tpu.dot_dimension_numbers<[2], [1], [1], [2], [0, 0, 0, 1, 1, 2], [0], [0]>} : vector<8x8x8xbf16>, vector<8x8x32xbf16>, vector<8x8x32xf32> -> vector<8x8x32xf32>
    "tpu.trace_stop"() : () -> ()
    %62 = vector.extract_strided_slice %61 {offsets = [0, 0, 0], sizes = [2, 8, 32], strides = [1, 1, 1]} : vector<8x8x32xf32> to vector<2x8x32xf32>
    %63 = vector.extract_strided_slice %61 {offsets = [2, 0, 0], sizes = [2, 8, 32], strides = [1, 1, 1]} : vector<8x8x32xf32> to vector<2x8x32xf32>
    %64 = vector.extract_strided_slice %61 {offsets = [4, 0, 0], sizes = [2, 8, 32], strides = [1, 1, 1]} : vector<8x8x32xf32> to vector<2x8x32xf32>
    %65 = vector.extract_strided_slice %61 {offsets = [6, 0, 0], sizes = [2, 8, 32], strides = [1, 1, 1]} : vector<8x8x32xf32> to vector<2x8x32xf32>
    %66 = tpu.concatenate %62, %63, %64, %65 in 2 : vector<2x8x32xf32>, vector<2x8x32xf32>, vector<2x8x32xf32>, vector<2x8x32xf32> -> vector<2x8x128xf32>
    %67 = vector.shape_cast %66 : vector<2x8x128xf32> to vector<16x128xf32>
    %68 = arith.truncf %67 : vector<16x128xf32> to vector<16x128xbf16>
    %c0_20 = arith.constant 0 : index
    %c0_21 = arith.constant 0 : index
    %69 = vector.load %arg6[%c0_20, %c0_21] : memref<128x128xbf16, #tpu.memory_space<vmem>>, vector<128x128xbf16>
    %cst_22 = arith.constant dense<0.000000e+00> : vector<16x128xf32>
    %70 = tpu.matmul %68, %69, %cst_22 {dimension_numbers = #tpu.dot_dimension_numbers<[1], [0], [0], [1], [0, 0, 1, 1], [], []>} : vector<16x128xbf16>, vector<128x128xbf16>, vector<16x128xf32> -> vector<16x128xf32>
    %71 = arith.addf %2, %70 : vector<16x128xf32>
    %c0_23 = arith.constant 0 : index
    %c0_24 = arith.constant 0 : index
    %72 = vector.load %arg7[%c0_23, %c0_24] : memref<1x128xf32, #tpu.memory_space<vmem>>, vector<1x128xf32>
    %73 = vector.broadcast %72 : vector<1x128xf32> to vector<16x128xf32>
    %74 = arith.addf %71, %73 : vector<16x128xf32>
    %c0_25 = arith.constant 0 : index
    %c0_26 = arith.constant 0 : index
    %75 = vector.load %arg8[%c0_25, %c0_26] : memref<1x128xf32, #tpu.memory_space<vmem>>, vector<1x128xf32>
    %c0_27 = arith.constant 0 : index
    %c0_28 = arith.constant 0 : index
    %76 = vector.load %arg9[%c0_27, %c0_28] : memref<1x128xf32, #tpu.memory_space<vmem>>, vector<1x128xf32>
    %cst_29 = arith.constant dense<0.000000e+00> : vector<16xf32>
    %77 = vector.multi_reduction <add>, %74, %cst_29 [1] : vector<16x128xf32> to vector<16xf32>
    %78 = vector.shape_cast %77 : vector<16xf32> to vector<16x1xf32>
    %cst_30 = arith.constant 1.280000e+02 : f32
    %79 = vector.broadcast %cst_30 : f32 to vector<16x1xf32>
    %80 = arith.divf %78, %79 : vector<16x1xf32>
    %81 = vector.broadcast %80 : vector<16x1xf32> to vector<16x128xf32>
    %82 = arith.subf %74, %81 : vector<16x128xf32>
    %83 = arith.mulf %82, %82 : vector<16x128xf32>
    %cst_31 = arith.constant dense<0.000000e+00> : vector<16xf32>
    %84 = vector.multi_reduction <add>, %83, %cst_31 [1] : vector<16x128xf32> to vector<16xf32>
    %85 = vector.shape_cast %84 : vector<16xf32> to vector<16x1xf32>
    %cst_32 = arith.constant 1.280000e+02 : f32
    %86 = vector.broadcast %cst_32 : f32 to vector<16x1xf32>
    %87 = arith.divf %85, %86 : vector<16x1xf32>
    %cst_33 = arith.constant 9.99999974E-6 : f32
    %88 = vector.broadcast %cst_33 : f32 to vector<16x1xf32>
    %89 = arith.addf %87, %88 : vector<16x1xf32>
    %90 = math.rsqrt %89 : vector<16x1xf32>
    %91 = vector.broadcast %90 : vector<16x1xf32> to vector<16x128xf32>
    %92 = arith.mulf %82, %91 : vector<16x128xf32>
    %93 = vector.broadcast %75 : vector<1x128xf32> to vector<16x128xf32>
    %94 = arith.mulf %92, %93 : vector<16x128xf32>
    %95 = vector.broadcast %76 : vector<1x128xf32> to vector<16x128xf32>
    %96 = arith.addf %94, %95 : vector<16x128xf32>
    %97 = arith.truncf %96 : vector<16x128xf32> to vector<16x128xbf16>
    %c0_34 = arith.constant 0 : index
    %c0_35 = arith.constant 0 : index
    %98 = vector.load %arg10[%c0_34, %c0_35] : memref<128x512xbf16, #tpu.memory_space<vmem>>, vector<128x512xbf16>
    %cst_36 = arith.constant dense<0.000000e+00> : vector<16x512xf32>
    %99 = tpu.matmul %97, %98, %cst_36 {dimension_numbers = #tpu.dot_dimension_numbers<[1], [0], [0], [1], [0, 0, 1, 1], [], []>} : vector<16x128xbf16>, vector<128x512xbf16>, vector<16x512xf32> -> vector<16x512xf32>
    %c0_37 = arith.constant 0 : index
    %c0_38 = arith.constant 0 : index
    %100 = vector.load %arg11[%c0_37, %c0_38] : memref<1x512xf32, #tpu.memory_space<vmem>>, vector<1x512xf32>
    %101 = vector.broadcast %100 : vector<1x512xf32> to vector<16x512xf32>
    %102 = arith.addf %99, %101 : vector<16x512xf32>
    %cst_39 = arith.constant 5.000000e-01 : f32
    %103 = vector.broadcast %cst_39 : f32 to vector<16x512xf32>
    %104 = arith.mulf %103, %102 : vector<16x512xf32>
    %cst_40 = arith.constant 4.471500e-02 : f32
    %105 = vector.broadcast %cst_40 : f32 to vector<16x512xf32>
    %106 = arith.mulf %105, %102 : vector<16x512xf32>
    %107 = arith.mulf %106, %102 : vector<16x512xf32>
    %108 = arith.mulf %107, %102 : vector<16x512xf32>
    %109 = arith.addf %102, %108 : vector<16x512xf32>
    %cst_41 = arith.constant 0.797884583 : f32
    %110 = vector.broadcast %cst_41 : f32 to vector<16x512xf32>
    %111 = arith.mulf %110, %109 : vector<16x512xf32>
    %112 = math.tanh %111 : vector<16x512xf32>
    %cst_42 = arith.constant 1.000000e+00 : f32
    %113 = vector.broadcast %cst_42 : f32 to vector<16x512xf32>
    %114 = arith.addf %113, %112 : vector<16x512xf32>
    %115 = arith.mulf %104, %114 : vector<16x512xf32>
    %116 = arith.truncf %115 : vector<16x512xf32> to vector<16x512xbf16>
    %c0_43 = arith.constant 0 : index
    %c0_44 = arith.constant 0 : index
    %117 = vector.load %arg12[%c0_43, %c0_44] : memref<512x128xbf16, #tpu.memory_space<vmem>>, vector<512x128xbf16>
    %cst_45 = arith.constant dense<0.000000e+00> : vector<16x128xf32>
    %118 = tpu.matmul %116, %117, %cst_45 {dimension_numbers = #tpu.dot_dimension_numbers<[1], [0], [0], [1], [0, 0, 1, 1], [], []>} : vector<16x512xbf16>, vector<512x128xbf16>, vector<16x128xf32> -> vector<16x128xf32>
    %c0_46 = arith.constant 0 : index
    %c0_47 = arith.constant 0 : index
    %119 = vector.load %arg13[%c0_46, %c0_47] : memref<1x128xf32, #tpu.memory_space<vmem>>, vector<1x128xf32>
    %120 = vector.broadcast %119 : vector<1x128xf32> to vector<16x128xf32>
    %121 = arith.addf %118, %120 : vector<16x128xf32>
    %122 = arith.addf %74, %121 : vector<16x128xf32>
    %123 = vector.shape_cast %122 : vector<16x128xf32> to vector<2x8x128xf32>
    %124 = arith.truncf %123 : vector<2x8x128xf32> to vector<2x8x128xbf16>
    %c0_48 = arith.constant 0 : index
    %c0_49 = arith.constant 0 : index
    %c0_50 = arith.constant 0 : index
    %125 = vector.load %arg14[%c0_48, %c0_49, %c0_50] : memref<2x8x128xbf16, #tpu.memory_space<vmem>>, vector<2x8x128xbf16>
    tpu.vector_store %arg14[%c0_48, %c0_49, %c0_50], %124 {strides = array<i32>} : memref<2x8x128xbf16, #tpu.memory_space<vmem>>, vector<2x8x128xbf16>,
    return
  }
  func.func @transform_0(%arg0: i32) -> (i32, i32, i32) {
    %c0_i32 = arith.constant 0 : i32
    %c0_i32_0 = arith.constant 0 : i32
    %c0_i32_1 = arith.constant 0 : i32
    return %arg0, %c0_i32, %c0_i32_0 : i32, i32, i32
  }
  func.func @transform_1(%arg0: i32) -> (i32, i32) {
    %c0_i32 = arith.constant 0 : i32
    %c0_i32_0 = arith.constant 0 : i32
    %c0_i32_1 = arith.constant 0 : i32
    return %c0_i32, %c0_i32_0 : i32, i32
  }
  func.func @transform_2(%arg0: i32) -> (i32, i32) {
    %c0_i32 = arith.constant 0 : i32
    %c0_i32_0 = arith.constant 0 : i32
    %c0_i32_1 = arith.constant 0 : i32
    return %c0_i32, %c0_i32_0 : i32, i32
  }
  func.func @transform_3(%arg0: i32) -> (i32, i32) {
    %c0_i32 = arith.constant 0 : i32
    %c0_i32_0 = arith.constant 0 : i32
    %c0_i32_1 = arith.constant 0 : i32
    return %c0_i32, %c0_i32_0 : i32, i32
  }
  func.func @transform_4(%arg0: i32) -> (i32, i32) {
    %c0_i32 = arith.constant 0 : i32
    %c0_i32_0 = arith.constant 0 : i32
    %c0_i32_1 = arith.constant 0 : i32
    return %c0_i32, %c0_i32_0 : i32, i32
  }
  func.func @transform_5(%arg0: i32) -> (i32, i32) {
    %c0_i32 = arith.constant 0 : i32
    %c0_i32_0 = arith.constant 0 : i32
    %c0_i32_1 = arith.constant 0 : i32
    return %c0_i32, %c0_i32_0 : i32, i32
  }
  func.func @transform_6(%arg0: i32) -> (i32, i32) {
    %c0_i32 = arith.constant 0 : i32
    %c0_i32_0 = arith.constant 0 : i32
    %c0_i32_1 = arith.constant 0 : i32
    return %c0_i32, %c0_i32_0 : i32, i32
  }
  func.func @transform_7(%arg0: i32) -> (i32, i32) {
    %c0_i32 = arith.constant 0 : i32
    %c0_i32_0 = arith.constant 0 : i32
    %c0_i32_1 = arith.constant 0 : i32
    return %c0_i32, %c0_i32_0 : i32, i32
  }
  func.func @transform_8(%arg0: i32) -> (i32, i32) {
    %c0_i32 = arith.constant 0 : i32
    %c0_i32_0 = arith.constant 0 : i32
    %c0_i32_1 = arith.constant 0 : i32
    return %c0_i32, %c0_i32_0 : i32, i32
  }
  func.func @transform_9(%arg0: i32) -> (i32, i32) {
    %c0_i32 = arith.constant 0 : i32
    %c0_i32_0 = arith.constant 0 : i32
    %c0_i32_1 = arith.constant 0 : i32
    return %c0_i32, %c0_i32_0 : i32, i32
  }
  func.func @transform_10(%arg0: i32) -> (i32, i32) {
    %c0_i32 = arith.constant 0 : i32
    %c0_i32_0 = arith.constant 0 : i32
    %c0_i32_1 = arith.constant 0 : i32
    return %c0_i32, %c0_i32_0 : i32, i32
  }
  func.func @transform_11(%arg0: i32) -> (i32, i32) {
    %c0_i32 = arith.constant 0 : i32
    %c0_i32_0 = arith.constant 0 : i32
    %c0_i32_1 = arith.constant 0 : i32
    return %c0_i32, %c0_i32_0 : i32, i32
  }
  func.func @transform_12(%arg0: i32) -> (i32, i32) {
    %c0_i32 = arith.constant 0 : i32
    %c0_i32_0 = arith.constant 0 : i32
    %c0_i32_1 = arith.constant 0 : i32
    return %c0_i32, %c0_i32_0 : i32, i32
  }
  func.func @transform_13(%arg0: i32) -> (i32, i32, i32) {
    %c0_i32 = arith.constant 0 : i32
    %c0_i32_0 = arith.constant 0 : i32
    %c0_i32_1 = arith.constant 0 : i32
    return %arg0, %c0_i32, %c0_i32_0 : i32, i32, i32
  }
}

</mosaic_0001>

<bundles_post_ra>
// kernel: tpu_custom_call.1
= control target key start
LH: loop header
LB: loop body
LE: loop exit
PB: predicated region body
PF: predicated region fallthrough
CT: control target
= control target key end

     0   :  { %18 = vsyncpa [#allocation3], 0  ;;  %s3106_s0 = inlined_call_operand.hbm [shape: bf16[2,8,128], index: 0, kind: input, shape index: {}]   ;;  %s3107_s1 = inlined_call_operand.hbm [shape: f32[1,128], index: 1, kind: input, shape index: {}]   ;;  %s3108_s2 = inlined_call_operand.hbm [shape: f32[1,128], index: 2, kind: input, shape index: {}]   ;;  %s3109_s3 = inlined_call_operand.hbm [shape: bf16[128,384], index: 3, kind: input, shape index: {}]   ;;  %s3110_s4 = inlined_call_operand.vmem [shape: f32[1,384], index: 4, kind: input, shape index: {}]   ;;  %s3111_s5 = inlined_call_operand.hbm [shape: bf16[128,128], index: 5, kind: input, shape index: {}]   ;;  %s3112_s6 = inlined_call_operand.hbm [shape: f32[1,128], index: 6, kind: input, shape index: {}]   ;;  %s3113_s7 = inlined_call_operand.hbm [shape: f32[1,128], index: 7, kind: input, shape index: {}]   ;;  %s3114_s8 = inlined_call_operand.hbm [shape: f32[1,128], index: 8, kind: input, shape index: {}]   ;;  %s3115_s9 = inlined_call_operand.hbm [shape: bf16[128,512], index: 9, kind: input, shape index: {}]   ;;  %s3116_s10 = inlined_call_operand.vmem [shape: f32[1,512], index: 10, kind: input, shape index: {}]   ;;  %s3117_s11 = inlined_call_operand.hbm [shape: bf16[512,128], index: 11, kind: input, shape index: {}]   ;;  %s3118_s12 = inlined_call_operand.vmem [shape: f32[1,128], index: 12, kind: input, shape index: {}]   ;;  %s3119_s13 = inlined_call_operand.hbm [shape: bf16[2,8,128], index: 13, kind: output, shape index: {}]  }
   0x1   :  { %19 = vsyncpa [#allocation6], 0 }
   0x2   :  { %20 = vsyncpa [#allocation9], 0 }
   0x3   :  { %21 = vsyncpa [#allocation12], 0 }
   0x4   :  { %22 = vsyncpa [#allocation15], 0 }
   0x5   :  { %23 = vsyncpa [#allocation18], 0  ;;  %s43_s27 = sshll.u32 %s3107_s1, 4  ;;  %s44_s27 = int_to_ptr.hbm [resolvable:$true] %s43_s27 }
   0x6   :  { %24 = vsyncpa [#allocation4], 0  ;;  %s2755_s28 = smov [#allocation5]   ;;  %s64_s15 = sshll.u32 %s3109_s3, 4  ;;  %s65_s15 = int_to_ptr.hbm [resolvable:$true] %s64_s15 }
   0x7   :  { %s45_s29 = sshll.u32 %s2755_s28, 4  ;;  %s2756_s16 = smov [#allocation8]   ;;  %s46_s29 = int_to_ptr.vmem [resolvable:$true] %s45_s29 }
   0x8   :  { %48 = dma.hbm_to_vmem [thread:$0]  %s44_s27, 16, %s46_s29, [#allocation6]  }
   0x9   :  { %s66_s17 = sshll.u32 %s2756_s16, 4  ;;  %s2757_s18 = smov 192   ;;  %s67_s17 = int_to_ptr.vmem [resolvable:$true] %s66_s17 }
   0xa   :  { %s2758_s19 = smov 12   ;;  %s93_s1 = sshll.u32 %s3112_s6, 4  ;;  %s94_s1 = int_to_ptr.hbm [resolvable:$true] %s93_s1 }
   0xb   :  { %72 = dma.hbm_to_vmem [thread:$0]  %s65_s15, 3072, %s67_s17, [#allocation9], %s2757_s18, %s2757_s18, %s2758_s19  }
   0xc   :  { %s2759_s22 = smov [#allocation11]   ;;  %s115_s3 = sshll.u32 %s3114_s8, 4  ;;  %s116_s3 = int_to_ptr.hbm [resolvable:$true] %s115_s3 }
   0xd   :  { %s95_s23 = sshll.u32 %s2759_s22, 4  ;;  %s2760_s26 = smov [#allocation14]   ;;  %s96_s23 = int_to_ptr.vmem [resolvable:$true] %s95_s23 }
   0xe   :  { %98 = dma.hbm_to_vmem [thread:$0]  %s94_s1, 16, %s96_s23, [#allocation12]  }
   0xf   :  { %s117_s27 = sshll.u32 %s2760_s26, 4  ;;  %s29_s30 = sshll.u32 %s3106_s0, 4  ;;  %s118_s27 = int_to_ptr.vmem [resolvable:$true] %s117_s27  ;;  %s30_s30 = int_to_ptr.hbm [resolvable:$true] %s29_s30 }
  0x10   :  { %120 = dma.hbm_to_vmem [thread:$0]  %s116_s3, 16, %s118_s27, [#allocation15]  }
  0x11   :  { %s2761_s6 = smov [#allocation2]   ;;  %s54_s17 = sshll.u32 %s3108_s2, 4  ;;  %s55_s17 = int_to_ptr.hbm [resolvable:$true] %s54_s17 }
  0x12   :  { %s31_s14 = sshll.u32 %s2761_s6, 4  ;;  %s2762_s18 = smov 64   ;;  %s32_s14 = int_to_ptr.vmem [resolvable:$true] %s31_s14 }
  0x13   :  { %s2763_s8 = smov 4   ;;  %s2764_s19 = smov [#allocation7]  }
  0x14   :  { %37 = dma.hbm_to_vmem [thread:$0]  %s30_s30, 128, %s32_s14, [#allocation3], %s2762_s18, %s2762_s18, %s2763_s8  }
  0x15   :  { %s56_s20 = sshll.u32 %s2764_s19, 4  ;;  %s79_s1 = sshll.u32 %s3111_s5, 4  ;;  %s57_s20 = int_to_ptr.vmem [resolvable:$true] %s56_s20  ;;  %s80_s1 = int_to_ptr.hbm [resolvable:$true] %s79_s1 }
  0x16   :  { %59 = dma.hbm_to_vmem [thread:$0]  %s55_s17, 16, %s57_s20, [#allocation6]  }
  0x17   :  { %s104_s2 = sshll.u32 %s3113_s7, 4  ;;  %s2765_s24 = smov [#allocation10]   ;;  %s105_s2 = int_to_ptr.hbm [resolvable:$true] %s104_s2 }
  0x18   :  { %s81_s25 = sshll.u32 %s2765_s24, 4  ;;  %s2766_s3 = smov [#allocation13]   ;;  %s82_s25 = int_to_ptr.vmem [resolvable:$true] %s81_s25 }
  0x19   :  { %87 = dma.hbm_to_vmem [thread:$0]  %s80_s1, 1024, %s82_s25, [#allocation9], %s2762_s18, %s2762_s18, %s2763_s8  }
  0x1a   :  { %s106_s26 = sshll.u32 %s2766_s3, 4  ;;  %s125_s5 = sshll.u32 %s3115_s9, 4  ;;  %s107_s26 = int_to_ptr.vmem [resolvable:$true] %s106_s26  ;;  %s126_s5 = int_to_ptr.hbm [resolvable:$true] %s125_s5 }
  0x1b   :  { %109 = dma.hbm_to_vmem [thread:$0]  %s105_s2, 16, %s107_s26, [#allocation12]  }
  0x1c   :  { %s2767_s29 = smov [#allocation16]   ;;  %s140_s14 = sshll.u32 %s3117_s11, 4  ;;  %s141_s14 = int_to_ptr.hbm [resolvable:$true] %s140_s14 }
  0x1d   :  { %s127_s30 = sshll.u32 %s2767_s29, 4  ;;  %s2768_s15 = smov 256   ;;  %s128_s30 = int_to_ptr.vmem [resolvable:$true] %s127_s30 }
  0x1e   :  { %s2769_s16 = smov 16   ;;  %s2770_s17 = smov [#allocation17]  }
  0x1f   :  { %133 = dma.hbm_to_vmem [thread:$0]  %s126_s5, 4096, %s128_s30, [#allocation15], %s2768_s15, %s2768_s15, %s2769_s16  }
  0x20   :  { %s142_s19 = sshll.u32 %s2770_s17, 4  ;;  %s143_s19 = int_to_ptr.vmem [resolvable:$true] %s142_s19 }
  0x21   :  { %148 = dma.hbm_to_vmem [thread:$0]  %s141_s14, 4096, %s143_s19, [#allocation18], %s2762_s18, %s2762_s18, %s2763_s8  }
  0x22   :  { %2741 = dma.done.wait [#allocation3], 128  }
  0x23   :  { %2742 = vsyncadd [#allocation3], 4294967168 }
  0x24   :  { %2743 = dma.done.wait [#allocation6], 32  }
  0x25   :  { %2744 = vsyncadd [#allocation6], 4294967264 }
  0x26   :  { %2745 = dma.done.wait [#allocation9], 4096  }
  0x27   :  { %2746 = vsyncadd [#allocation9], 4294963200 }
  0x28   :  { %2747 = dma.done.wait [#allocation12], 32  }
  0x29   :  { %2748 = vsyncadd [#allocation12], 4294967264 }
  0x2a   :  { %2749 = dma.done.wait [#allocation15], 4112  }
  0x2b   :  { %2750 = vsyncadd [#allocation15], 4294963184 }
  0x2c   :  { %2751 = dma.done.wait [#allocation18], 4096  }
  0x2d   :  { %2752 = vsyncadd [#allocation18], 4294963200  ;;  %v2370_v0 = vld [vmem:[#allocation2] sm:$0xff]   ;;  %v2771_v3 = vmov 128.0   ;;  %v1959_v18 = vld [vmem:[#allocation8 + $0xa8] sm:$0xf] }
  0x2e   :  { %v2884_v1 = vunpack.c.l.bf16 %v2370_v0  ;;  %v2887_v2 = vunpack.c.h.bf16 %v2370_v0  ;;  %2419 = vrcp.f32 %v2771_v3  ;;  %v2295_v19 = vld [vmem:[#allocation8 + $0xb0] sm:$0xf0]  ;;  %v2294_v20 = vld [vmem:[#allocation8 + $0xac] sm:$0xf]  ;;  %v1961_v22 = vld [vmem:[#allocation8 + $0xb4] sm:$0xf0] }
  0x2f   :  { %v1960_v21 = vor.u32 %v2295_v19, %v1959_v18  ;;  %v1967_v23 = vld [vmem:[#allocation8 + $0xb0] sm:$0xf]  ;;  %v2296_v24 = vld [vmem:[#allocation8 + $0xb8] sm:$0xf0]  ;;  %v1964_v25 = vor.u32 %v2294_v20, %v1961_v22  ;;  %v2291_v29 = vld [vmem:[#allocation8 + $0x94] sm:$0xf] }
  0x30   :  { %198 = vadd.xlane.f32.xlu0 %v2884_v1  ;;  %v1968_v26 = vor.u32 %v2296_v24, %v1967_v23  ;;  %v1947_v27 = vld [vmem:[#allocation8 + $0x90] sm:$0xf]  ;;  %v2292_v28 = vld [vmem:[#allocation8 + $0x98] sm:$0xf0]  ;;  %v1949_v31 = vld [vmem:[#allocation8 + $0x9c] sm:$0xf0] }
  0x31   :  { %424 = vmatpush.bf16.msra.mxu0 %v1960_v21  ;;  %438 = vmatpush.bf16.msra.mxu1 %v1964_v25  ;;  %v1948_v30 = vor.u32 %v2292_v28, %v1947_v27  ;;  %v1955_v32 = vld [vmem:[#allocation8 + $0x98] sm:$0xf]  ;;  %v2293_v33 = vld [vmem:[#allocation8 + $0xa0] sm:$0xf0]  ;;  %v1952_v34 = vor.u32 %v2291_v29, %v1949_v31  ;;  %v2288_v38 = vld [vmem:[#allocation8 + $0x7c] sm:$0xf] }
  0x32   :  { %452 = vmatpush.bf16.msra.mxu2 %v1968_v26  ;;  %v1956_v35 = vor.u32 %v2293_v33, %v1955_v32  ;;  %v1935_v36 = vld [vmem:[#allocation8 + $0x78] sm:$0xf]  ;;  %v2289_v37 = vld [vmem:[#allocation8 + $0x80] sm:$0xf0]  ;;  %v1937_v40 = vld [vmem:[#allocation8 + $0x84] sm:$0xf0] }
  0x33   :  { %v1936_v39 = vor.u32 %v2289_v37, %v1935_v36  ;;  %v1943_v41 = vld [vmem:[#allocation8 + $0x80] sm:$0xf]  ;;  %v2290_v42 = vld [vmem:[#allocation8 + $0x88] sm:$0xf0]  ;;  %v1940_v43 = vor.u32 %v2288_v38, %v1937_v40  ;;  %v2285_v47 = vld [vmem:[#allocation8 + $0x64] sm:$0xf] }
  0x34   :  { %v2420_v4 = vpop.eup %2419  ;;  %v1944_v44 = vor.u32 %v2290_v42, %v1943_v41  ;;  %v1923_v45 = vld [vmem:[#allocation8 + $0x60] sm:$0xf]  ;;  %v2286_v46 = vld [vmem:[#allocation8 + $0x68] sm:$0xf0]  ;;  %v1925_v49 = vld [vmem:[#allocation8 + $0x6c] sm:$0xf0] }
  0x35   :  { %v203_v5 = vmul.f32 128.0, %v2420_v4  ;;  %vm207_vm0 = vweird.f32 %v2420_v4  ;;  %425 = vmatpush.bf16.msra.mxu0 %v1948_v30  ;;  %439 = vmatpush.bf16.msra.mxu1 %v1952_v34  ;;  %v1924_v48 = vor.u32 %v2286_v46, %v1923_v45  ;;  %v1931_v50 = vld [vmem:[#allocation8 + $0x68] sm:$0xf]  ;;  %v2287_v51 = vld [vmem:[#allocation8 + $0x70] sm:$0xf0]  ;;  %v1928_v52 = vor.u32 %v2285_v47, %v1925_v49  ;;  %s2773_s20 = smov 32  }
  0x36   :  { %453 = vmatpush.bf16.msra.mxu2 %v1956_v35  ;;  %v1932_v53 = vor.u32 %v2287_v51, %v1931_v50  ;;  %v1911_v54 = vld [vmem:[#allocation8 + $0x48] sm:$0xf]  ;;  %v2283_v55 = vld [vmem:[#allocation8 + $0x50] sm:$0xf0]  ;;  %v2282_v56 = vld [vmem:[#allocation8 + $0x4c] sm:$0xf] }
  0x37   :  { %v204_v6 = vsub.f32 1.0, %v203_v5  ;;  %v1912_v57 = vor.u32 %v2283_v55, %v1911_v54  ;;  %v1913_v58 = vld [vmem:[#allocation8 + $0x54] sm:$0xf0]  ;;  %v1919_v59 = vld [vmem:[#allocation8 + $0x50] sm:$0xf]  ;;  %vm506_vm7 = vcmask 261120  }
  0x38   :  { %200 = vadd.xlane.f32.xlu0 %v2887_v2  ;;  %v2284_v60 = vld [vmem:[#allocation8 + $0x58] sm:$0xf0]  ;;  %v1916_v61 = vor.u32 %v2282_v56, %v1913_v58  ;;  %v1899_v63 = vld [vmem:[#allocation8 + $0x30] sm:$0xf]  ;;  %v2279_v3 = vld [vmem:[#allocation8 + $0x34] sm:$0xf] }
  0x39   :  { %v205_v7 = vmul.f32 %v2420_v4, %v204_v6  ;;  %426 = vmatpush.bf16.msra.mxu0 %v1936_v39  ;;  %440 = vmatpush.bf16.msra.mxu1 %v1940_v43  ;;  %v1920_v62 = vor.u32 %v2284_v60, %v1919_v59  ;;  %v2280_v0 = vld [vmem:[#allocation8 + $0x38] sm:$0xf0]  ;;  %v1901_v5 = vld [vmem:[#allocation8 + $0x3c] sm:$0xf0]  ;;  %v1907_v6 = vld [vmem:[#allocation8 + $0x38] sm:$0xf] }
  0x3a   :  { %454 = vmatpush.bf16.msra.mxu2 %v1944_v44  ;;  %v1895_v18 = vld [vmem:[#allocation8 + $0x20] sm:$0xf]  ;;  %v2278_v19 = vld [vmem:[#allocation8 + $0x28] sm:$0xf0]  ;;  %v2273_v24 = vld [vmem:[#allocation8 + $0x4] sm:$0xf] }
  0x3b   :  { %v206_v8 = vadd.f32 %v2420_v4, %v205_v7  ;;  %v2281_v7 = vld [vmem:[#allocation8 + $0x40] sm:$0xf0]  ;;  %v1896_v21 = vor.u32 %v2278_v19, %v1895_v18  ;;  %v1875_v22 = vld [vmem:[#allocation8] sm:$0xf]  ;;  %v2274_v23 = vld [vmem:[#allocation8 + $0x8] sm:$0xf0] }
  0x3c   :  { %v1876_v26 = vor.u32 %v2274_v23, %v1875_v22  ;;  %v1877_v27 = vld [vmem:[#allocation8 + $0xc] sm:$0xf0]  ;;  %v1883_v28 = vld [vmem:[#allocation8 + $0x8] sm:$0xf]  ;;  %v2275_v29 = vld [vmem:[#allocation8 + $0x10] sm:$0xf0] }
  0x3d   :  { %v2890_v9 = vsel %vm207_vm0, %v2420_v4, %v206_v8  ;;  %427 = vmatpush.bf16.msra.mxu0 %v1924_v48  ;;  %441 = vmatpush.bf16.msra.mxu1 %v1928_v52  ;;  %v1900_v4 = vor.u32 %v2280_v0, %v1899_v63  ;;  %v1904_v8 = vor.u32 %v2279_v3, %v1901_v5  ;;  %v2413_v50 = vld [vmem:[#allocation5] ss:$0 sm:$0xff]  ;;  %v2414_v55 = vld [vmem:[#allocation7] ss:$0 sm:$0xff]  ;;  %vm871_vm8 = vcmask 1043456   ;;  %s2774_s22 = smov [#allocation19]  }
  0x3e   :  { %455 = vmatpush.bf16.msra.mxu2 %v1932_v53  ;;  %v1880_v31 = vor.u32 %v2273_v24, %v1877_v27  ;;  %v1884_v32 = vor.u32 %v2275_v29, %v1883_v28  ;;  %vm667_vm9 = vcmask 64512   ;;  %s1853_s23 = sshll.u32 %s2774_s22, 4  ;;  %s1855_s24 = sshll.u32 %s3119_s13, 4  ;;  %s1854_s23 = int_to_ptr.vmem [resolvable:$true] %s1853_s23  ;;  %s1856_s24 = int_to_ptr.hbm [resolvable:$true] %s1855_s24 }
  0x41   :  { %428 = vmatpush.bf16.msra.mxu0 %v1912_v57  ;;  %442 = vmatpush.bf16.msra.mxu1 %v1916_v61 }
  0x42   :  { %456 = vmatpush.bf16.msra.mxu2 %v1920_v62 }
  0x45   :  { %429 = vmatpush.bf16.msra.mxu0 %v1900_v4  ;;  %443 = vmatpush.bf16.msra.mxu1 %v1904_v8 }
  0xa3   :  { %v199_v10 = vpop.xlane.xlu0 %198 }
  0xa4   :  { %v209_v11 = vmul.f32 %v2890_v9, %v199_v10  ;;  %v1908_v10 = vor.u32 %v2281_v7, %v1907_v6 }
  0xa6   :  { %v2894_v12 = vsub.f32 %v2884_v1, %v209_v11  ;;  %457 = vmatpush.bf16.msra.mxu2 %v1908_v10  ;;  %v1887_v11 = vld [vmem:[#allocation8 + $0x18] sm:$0xf] }
  0xa8   :  { %v213_v13 = vmul.f32 %v2894_v12, %v2894_v12 }
  0xaa   :  { %215 = vadd.xlane.f32.xlu1 %v213_v13  ;;  %v2277_v13 = vld [vmem:[#allocation8 + $0x20] sm:$0xf0]  ;;  %458 = vmatpush.bf16.msra.mxu2 %v1896_v21 }
  0xab   :  { %v201_v14 = vpop.xlane.xlu0 %200 }
  0xac   :  { %v210_v15 = vmul.f32 %v2890_v9, %v201_v14  ;;  %v2276_v14 = vld [vmem:[#allocation8 + $0x1c] sm:$0xf] }
  0xae   :  { %v2900_v16 = vsub.f32 %v2887_v2, %v210_v15  ;;  %v1888_v15 = vor.u32 %v2277_v13, %v1887_v11  ;;  %459 = vmatpush.bf16.msra.mxu2 %v1884_v32 }
  0xb0   :  { %v214_v17 = vmul.f32 %v2900_v16, %v2900_v16  ;;  %430 = vmatpush.bf16.msra.mxu0 %v1888_v15 }
  0xb2   :  { %217 = vadd.xlane.f32.xlu1 %v214_v17  ;;  %v1889_v17 = vld [vmem:[#allocation8 + $0x24] sm:$0xf0] }
  0xb3   :  { %v1892_v20 = vor.u32 %v2276_v14, %v1889_v17 }
  0xb4   :  { %431 = vmatpush.bf16.msra.mxu0 %v1876_v26 }
  0xb5   :  { %444 = vmatpush.bf16.msra.mxu1 %v1892_v20 }
  0xb9   :  { %445 = vmatpush.bf16.msra.mxu1 %v1880_v31 }
 0x11d   :  { %v216_v25 = vpop.xlane.xlu1 %215 }
 0x11e   :  { %v219_v30 = vmul.f32 %v216_v25, %v2890_v9 }
 0x120   :  { %v221_v33 = vadd.f32 1e-05, %v219_v30 }
 0x122   :  { %2421 = vrsqrt.f32 %v221_v33  ;;  %vm229_vm2 = vweird.f32 %v221_v33 }
 0x125   :  { %v218_v34 = vpop.xlane.xlu1 %217 }
 0x126   :  { %v220_v35 = vmul.f32 %v218_v34, %v2890_v9 }
 0x128   :  { %v2422_v36 = vpop.eup %2421  ;;  %v222_v37 = vadd.f32 1e-05, %v220_v35 }
 0x129   :  { %v224_v38 = vmul.f32 %v2422_v36, %v221_v33  ;;  %vm230_vm1 = vweird.f32 %v2422_v36 }
 0x12a   :  { %2423 = vrsqrt.f32 %v222_v37  ;;  %vm231_vm3 = vmor %vm229_vm2, %vm230_vm1  ;;  %vm239_vm5 = vweird.f32 %v222_v37 }
 0x12b   :  { %v225_v39 = vmul.f32 %v2422_v36, %v224_v38 }
 0x12d   :  { %v226_v40 = vmul.f32 0.5, %v225_v39 }
 0x12f   :  { %v227_v41 = vsub.f32 1.5, %v226_v40 }
 0x130   :  { %v2424_v42 = vpop.eup %2423 }
 0x131   :  { %v228_v43 = vmul.f32 %v2422_v36, %v227_v41  ;;  %v234_v44 = vmul.f32 %v2424_v42, %v222_v37  ;;  %vm240_vm4 = vweird.f32 %v2424_v42 }
 0x132   :  { %vm241_vm6 = vmor %vm239_vm5, %vm240_vm4 }
 0x133   :  { %v235_v45 = vmul.f32 %v2424_v42, %v234_v44  ;;  %v232_v46 = vsel %vm231_vm3, %v2422_v36, %v228_v43 }
 0x134   :  { %v243_v49 = vmul.f32 %v232_v46, %v2894_v12  ;;  %v288_v12 = vld [vmem:[%s3110_s4] sm:$0x7]  ;;  %s2772_s4 = smov 96  }
 0x135   :  { %v236_v47 = vmul.f32 0.5, %v235_v45  ;;  %v290_v60 = vperm.slane %v288_v12, 0  ;;  %v291_v61 = vperm.slane %v288_v12, 1  ;;  %v292_v4 = vperm.slane %v288_v12, 2 }
 0x136   :  { %v248_v54 = vmul.f32 %v2413_v50, %v243_v49 }
 0x137   :  { %v237_v48 = vsub.f32 1.5, %v236_v47 }
 0x138   :  { %v253_v57 = vadd.f32 %v2414_v55, %v248_v54 }
 0x139   :  { %v238_v51 = vmul.f32 %v2424_v42, %v237_v48 }
 0x13b   :  { %v242_v52 = vsel %vm241_vm6, %v2424_v42, %v238_v51 }
 0x13c   :  { %v244_v53 = vmul.f32 %v242_v52, %v2900_v16 }
 0x13e   :  { %v249_v56 = vmul.f32 %v2413_v50, %v244_v53 }
 0x140   :  { %v254_v58 = vadd.f32 %v2414_v55, %v249_v56 }
 0x142   :  { %v255_v59 = vpack.c.bf16 %v254_v58, %v253_v57 }
 0x144   :  { %432 = vmatmul.bf16.vlgmr.msra.gmra.mxu0 %v255_v59  ;;  %446 = vmatmul.bf16.vlgmr.msra.gmra.mxu1 %v255_v59 }
 0x145   :  { %460 = vmatmul.bf16.vlgmr.msra.gmra.mxu2 %v255_v59 }
 0x1c1   :  { %v433_v62 = vpop.f32.mrf.mxu0  ;;  %v447_v63 = vpop.f32.mrf.mxu1 }
 0x1c2   :  { %v434_v0 = vadd.f32 %v433_v62, %v290_v60  ;;  %v448_v3 = vadd.f32 %v447_v63, %v291_v61 }
 0x1c4   :  { %v466_v16 = vpack.c.bf16 %v448_v3, %v434_v0 }
 0x1c6   :  { %476 = vrot.lane.b32.xlu2 %v466_v16, %s2762_s18  ;;  %v484_v5 = vrot.slane %v466_v16, 4 }
 0x1c8   :  { %v461_v6 = vpop.f32.mrf.mxu2  ;;  %v511_v7 = vsel %vm506_vm7, %v484_v5, 0 }
 0x1c9   :  { %v462_v8 = vadd.f32 %v461_v6, %v292_v4  ;;  %v435_v10 = vpop.f32.mrf.mxu0  ;;  %v449_v11 = vpop.f32.mrf.mxu1  ;;  %520 = vmatpush.bf16.xpose.msra.mxu3 %v511_v7 }
 0x1ca   :  { %v436_v13 = vadd.f32 %v435_v10, %v290_v60  ;;  %v450_v14 = vadd.f32 %v449_v11, %v291_v61 }
 0x1cb   :  { %v2913_v15 = vpack.c.bf16 %v462_v8, %v462_v8 }
 0x1cc   :  { %v468_v17 = vpack.c.bf16 %v450_v14, %v436_v13 }
 0x1cd   :  { %v873_v18 = vsel %vm871_vm8, %v2913_v15, 0 }
 0x1ce   :  { %882 = vmatpush.bf16.msrb.mxu1 %v873_v18  ;;  %478 = vrot.lane.b32.xlu1 %v468_v17, %s2762_s18  ;;  %v485_v19 = vrot.slane %v468_v17, 4 }
 0x1cf   :  { %474 = vrot.lane.b32.xlu0 %v468_v17, %s2772_s4  ;;  %472 = vrot.lane.b32.xlu2 %v466_v16, %s2772_s4 }
 0x1d0   :  { %1969 = vmatmul.msk.bf16.vlgmr.msra.gmra.mxu3 %vm506_vm7, %v466_v16  ;;  %v530_v20 = vsel %vm506_vm7, %v485_v19, 0  ;;  %v463_v30 = vpop.f32.mrf.mxu2 }
 0x1d1   :  { %539 = vmatpush.bf16.xpose.msrb.mxu3 %v530_v20  ;;  %v464_v31 = vadd.f32 %v463_v30, %v292_v4 }
 0x1d3   :  { %v2930_v33 = vpack.c.bf16 %v464_v31, %v464_v31 }
 0x1d5   :  { %v892_v41 = vsel %vm871_vm8, %v2930_v33, 0 }
 0x1d7   :  { %480 = vrot.lane.b32.xlu2 %v466_v16, %s2773_s20 }
 0x1df   :  { %482 = vrot.lane.b32.xlu2 %v468_v17, %s2773_s20 }
 0x1e0   :  { %1970 = vmatmul.msk.bf16.vlgmr.msrb.gmra.mxu3 %vm506_vm7, %v468_v17 }
 0x220   :  { %v477_v21 = vpop.permute.xlu2 %476 }
 0x221   :  { %v488_v22 = vrot.slane %v477_v21, 4 }
 0x223   :  { %v587_v23 = vsel %vm506_vm7, %v488_v22, 0 }
 0x224   :  { %596 = vmatpush.bf16.xpose.msrb.mxu2 %v587_v23 }
 0x229   :  { %v473_v24 = vpop.permute.xlu2 %472 }
 0x22a   :  { %v486_v25 = vrot.slane %v473_v24, 4 }
 0x22b   :  { %1973 = vmatmul.msk.bf16.vlgmr.msrb.gmra.mxu2 %vm506_vm7, %v477_v21 }
 0x22c   :  { %v549_v26 = vsel %vm506_vm7, %v486_v25, 0 }
 0x22d   :  { %558 = vmatpush.bf16.xpose.msra.mxu3 %v549_v26 }
 0x231   :  { %v481_v27 = vpop.permute.xlu2 %480 }
 0x232   :  { %v490_v28 = vrot.slane %v481_v27, 4 }
 0x234   :  { %1971 = vmatmul.msk.bf16.vlgmr.msra.gmra.mxu3 %vm506_vm7, %v473_v24  ;;  %v625_v29 = vsel %vm506_vm7, %v490_v28, 0 }
 0x235   :  { %634 = vmatpush.bf16.xpose.msrb.mxu3 %v625_v29 }
 0x239   :  { %v483_v32 = vpop.permute.xlu2 %482 }
 0x23a   :  { %v491_v35 = vrot.slane %v483_v32, 4 }
 0x23c   :  { %v644_v42 = vsel %vm506_vm7, %v491_v35, 0 }
 0x240   :  { %v479_v34 = vpop.permute.xlu1 %478 }
 0x241   :  { %v489_v36 = vrot.slane %v479_v34, 4  ;;  %v475_v37 = vpop.permute.xlu0 %474 }
 0x242   :  { %v487_v38 = vrot.slane %v475_v37, 4 }
 0x243   :  { %v606_v39 = vsel %vm506_vm7, %v489_v36, 0 }
 0x244   :  { %1975 = vmatmul.msk.bf16.vlgmr.msrb.gmra.mxu3 %vm506_vm7, %v481_v27  ;;  %v568_v40 = vsel %vm506_vm7, %v487_v38, 0  ;;  %615 = vmatpush.bf16.xpose.msra.mxu2 %v606_v39 }
 0x245   :  { %577 = vmatpush.bf16.xpose.msrb.mxu0 %v568_v40 }
 0x24b   :  { %1974 = vmatmul.msk.bf16.vlgmr.msra.gmra.mxu2 %vm506_vm7, %v479_v34 }
 0x24c   :  { %901 = vmatpush.bf16.msrb.mxu2 %v892_v41  ;;  %1972 = vmatmul.msk.bf16.vlgmr.msrb.gmra.mxu0 %vm506_vm7, %v475_v37 }
 0x24d   :  { %653 = vmatpush.bf16.xpose.msra.mxu0 %v644_v42 }
 0x253   :  { %v522_v43 = vpop.f32.mrf.mxu3 }
 0x254   :  { %v659_v44 = vmul.f32 0.17677669, %v522_v43 }
 0x256   :  { %v668_v45 = vsel %vm667_vm9, %v659_v44, -inf }
 0x257   :  { %669 = vmax.xlane.f32.xlu1 %v668_v45 }
 0x25b   :  { %v524_v46 = vpop.f32.mrf.mxu3 }
 0x25c   :  { %1976 = vmatmul.msk.bf16.vlgmr.msra.gmra.mxu0 %vm506_vm7, %v483_v32 }
 0x263   :  { %v541_v47 = vpop.f32.mrf.mxu3 }
 0x264   :  { %v660_v48 = vmul.f32 0.17677669, %v541_v47 }
 0x266   :  { %v671_v49 = vsel %vm667_vm9, %v660_v48, -inf }
 0x267   :  { %672 = vmax.xlane.f32.xlu2 %v671_v49 }
 0x26b   :  { %v543_v50 = vpop.f32.mrf.mxu3 }
 0x2ae   :  { %v598_v51 = vpop.f32.mrf.mxu2 }
 0x2af   :  { %v663_v52 = vmul.f32 0.17677669, %v598_v51 }
 0x2b1   :  { %v680_v53 = vsel %vm667_vm9, %v663_v52, -inf }
 0x2b2   :  { %681 = vmax.xlane.f32.xlu1 %v680_v53 }
 0x2b6   :  { %v600_v54 = vpop.f32.mrf.mxu2 }
 0x2b7   :  { %v560_v55 = vpop.f32.mrf.mxu3 }
 0x2b8   :  { %v661_v56 = vmul.f32 0.17677669, %v560_v55 }
 0x2ba   :  { %v674_v57 = vsel %vm667_vm9, %v661_v56, -inf }
 0x2bb   :  { %675 = vmax.xlane.f32.xlu0 %v674_v57 }
 0x2bf   :  { %v562_v58 = vpop.f32.mrf.mxu3 }
 0x2c7   :  { %v636_v59 = vpop.f32.mrf.mxu3 }
 0x2c8   :  { %v665_v4 = vmul.f32 0.17677669, %v636_v59 }
 0x2c9   :  { %v579_v12 = vpop.f32.mrf.mxu0 }
 0x2ca   :  { %v662_v60 = vmul.f32 0.17677669, %v579_v12  ;;  %v670_v61 = vpop.xlane.xlu1 %669  ;;  %v686_v6 = vsel %vm667_vm9, %v665_v4, -inf }
 0x2cb   :  { %v692_v62 = vsub.f32 %v659_v44, %v670_v61 }
 0x2cc   :  { %v677_v63 = vsel %vm667_vm9, %v662_v60, -inf }
 0x2cd   :  { %v700_v0 = vmul.f32 1.442695, %v692_v62  ;;  %678 = vmax.xlane.f32.xlu2 %v677_v63 }
 0x2ce   :  { %v617_v3 = vpop.f32.mrf.mxu2 }
 0x2cf   :  { %2425 = vpow2.f32 %v700_v0  ;;  %v638_v16 = vpop.f32.mrf.mxu3  ;;  %v664_v13 = vmul.f32 0.17677669, %v617_v3 }
 0x2d1   :  { %v581_v5 = vpop.f32.mrf.mxu0  ;;  %v683_v14 = vsel %vm667_vm9, %v664_v13, -inf }
 0x2d5   :  { %v2947_v7 = vpop.eup %2425  ;;  %687 = vmax.xlane.f32.xlu2 %v686_v6 }
 0x2d6   :  { %v619_v8 = vpop.f32.mrf.mxu2  ;;  %v716_v10 = vsel %vm667_vm9, %v2947_v7, 0.0 }
 0x2d7   :  { %717 = vadd.xlane.f32.xlu0 %v716_v10 }
 0x2d9   :  { %v655_v11 = vpop.f32.mrf.mxu0 }
 0x2da   :  { %v2952_v18 = vmul.f32 0.17677669, %v655_v11  ;;  %v673_v20 = vpop.xlane.xlu2 %672 }
 0x2db   :  { %v693_v21 = vsub.f32 %v660_v48, %v673_v20 }
 0x2dc   :  { %v689_v19 = vsel %vm667_vm9, %v2952_v18, -inf }
 0x2dd   :  { %v702_v22 = vmul.f32 1.442695, %v693_v21 }
 0x2df   :  { %684 = vmax.xlane.f32.xlu0 %v683_v14  ;;  %2427 = vpow2.f32 %v702_v22 }
 0x2e1   :  { %v657_v17 = vpop.f32.mrf.mxu0 }
 0x2e5   :  { %v2960_v23 = vpop.eup %2427 }
 0x2e6   :  { %v719_v24 = vsel %vm667_vm9, %v2960_v23, 0.0 }
 0x2e7   :  { %690 = vmax.xlane.f32.xlu0 %v689_v19 }
 0x2ed   :  { %494 = vrot.lane.b32.xlu2 %v2913_v15, %s2772_s4 }
 0x2fb   :  { %500 = vrot.lane.b32.xlu0 %v2930_v33, %s2762_s18 }
 0x316   :  { %720 = vadd.xlane.f32.xlu2 %v719_v24 }
 0x325   :  { %v682_v25 = vpop.xlane.xlu1 %681 }
 0x326   :  { %v696_v28 = vsub.f32 %v663_v52, %v682_v25 }
 0x328   :  { %v708_v30 = vmul.f32 1.442695, %v696_v28 }
 0x32e   :  { %v676_v26 = vpop.xlane.xlu0 %675 }
 0x32f   :  { %v694_v27 = vsub.f32 %v661_v56, %v676_v26 }
 0x331   :  { %v704_v29 = vmul.f32 1.442695, %v694_v27 }
 0x333   :  { %2429 = vpow2.f32 %v704_v29 }
 0x334   :  { %2431 = vpow2.f32 %v708_v30 }
 0x339   :  { %v2964_v31 = vpop.eup %2429 }
 0x33a   :  { %v722_v32 = vsel %vm667_vm9, %v2964_v31, 0.0  ;;  %v2968_v34 = vpop.eup %2431 }
 0x33b   :  { %723 = vadd.xlane.f32.xlu1 %v722_v32  ;;  %v728_v37 = vsel %vm667_vm9, %v2968_v34, 0.0 }
 0x340   :  { %v679_v35 = vpop.xlane.xlu2 %678 }
 0x341   :  { %v695_v36 = vsub.f32 %v662_v60, %v679_v35 }
 0x343   :  { %v706_v38 = vmul.f32 1.442695, %v695_v36  ;;  %729 = vadd.xlane.f32.xlu1 %v728_v37 }
 0x345   :  { %2433 = vpow2.f32 %v706_v38 }
 0x348   :  { %v688_v39 = vpop.xlane.xlu2 %687 }
 0x349   :  { %v698_v40 = vsub.f32 %v665_v4, %v688_v39 }
 0x34a   :  { %v718_v41 = vpop.xlane.xlu0 %717 }
 0x34b   :  { %v2972_v42 = vpop.eup %2433  ;;  %v712_v43 = vmul.f32 1.442695, %v698_v40  ;;  %2435 = vrcp.f32 %v718_v41  ;;  %v751_v54 = vand.u32 2147483648, %v718_v41  ;;  %v749_v57 = vand.u32 2147483647, %v718_v41 }
 0x34c   :  { %v725_v44 = vsel %vm667_vm9, %v2972_v42, 0.0  ;;  %vm745_vm11 = vweird.f32 %v718_v41 }
 0x34d   :  { %2437 = vpow2.f32 %v712_v43  ;;  %726 = vadd.xlane.f32.xlu2 %v725_v44  ;;  %v752_v59 = vor.u32 1.1754944e-38, %v751_v54  ;;  %vm750_vm13 = vcmp.eq.f32.partialorder %v749_v57, 8.507059e+37 }
 0x350   :  { %v495_v45 = vpop.permute.xlu2 %494 }
 0x351   :  { %v2436_v46 = vpop.eup %2435  ;;  %v911_v47 = vsel %vm871_vm8, %v495_v45, 0 }
 0x352   :  { %v741_v48 = vmul.f32 %v2436_v46, %v718_v41  ;;  %920 = vmatpush.bf16.msra.mxu3 %v911_v47  ;;  %v685_v49 = vpop.xlane.xlu0 %684  ;;  %vm746_vm10 = vweird.f32 %v2436_v46 }
 0x353   :  { %v2977_v50 = vpop.eup %2437  ;;  %v697_v51 = vsub.f32 %v664_v13, %v685_v49  ;;  %vm747_vm12 = vmor %vm745_vm11, %vm746_vm10 }
 0x354   :  { %v742_v52 = vsub.f32 1.0, %v741_v48  ;;  %v734_v53 = vsel %vm667_vm9, %v2977_v50, 0.0 }
 0x355   :  { %v710_v55 = vmul.f32 1.442695, %v697_v51  ;;  %735 = vadd.xlane.f32.xlu0 %v734_v53 }
 0x356   :  { %v743_v56 = vmul.f32 %v2436_v46, %v742_v52 }
 0x357   :  { %2439 = vpow2.f32 %v710_v55 }
 0x358   :  { %v744_v58 = vadd.f32 %v2436_v46, %v743_v56 }
 0x35a   :  { %v691_v12 = vpop.xlane.xlu0 %690  ;;  %v748_v60 = vsel %vm747_vm12, %v2436_v46, %v744_v58 }
 0x35b   :  { %v699_v61 = vsub.f32 %v2952_v18, %v691_v12  ;;  %v753_v62 = vsel %vm750_vm13, %v752_v59, %v748_v60 }
 0x35c   :  { %v754_v63 = vmul.f32 %v2947_v7, %v753_v62 }
 0x35d   :  { %v2983_v0 = vpop.eup %2439  ;;  %v714_v3 = vmul.f32 1.442695, %v699_v61 }
 0x35e   :  { %v731_v16 = vsel %vm667_vm9, %v2983_v0, 0.0  ;;  %v860_v4 = vpack.c.bf16 %v754_v63, %v754_v63 }
 0x35f   :  { %2441 = vpow2.f32 %v714_v3  ;;  %732 = vadd.xlane.f32.xlu1 %v731_v16 }
 0x360   :  { %1977 = vmatmul.msk.bf16.vlgmr.msrb.gmra.mxu1 %vm667_vm9, %v860_v4 }
 0x365   :  { %v2988_v5 = vpop.eup %2441  ;;  %502 = vrot.lane.b32.xlu2 %v2913_v15, %s2773_s20 }
 0x366   :  { %v737_v6 = vsel %vm667_vm9, %v2988_v5, 0.0 }
 0x367   :  { %738 = vadd.xlane.f32.xlu0 %v737_v6 }
 0x36d   :  { %498 = vrot.lane.b32.xlu2 %v2913_v15, %s2762_s18  ;;  %v501_v7 = vpop.permute.xlu0 %500 }
 0x36e   :  { %v968_v8 = vsel %vm871_vm8, %v501_v7, 0 }
 0x36f   :  { %977 = vmatpush.bf16.msra.mxu2 %v968_v8 }
 0x378   :  { %496 = vrot.lane.b32.xlu1 %v2930_v33, %s2772_s4 }
 0x37b   :  { %504 = vrot.lane.b32.xlu0 %v2930_v33, %s2773_s20 }
 0x389   :  { %v721_v10 = vpop.xlane.xlu2 %720 }
 0x38a   :  { %2443 = vrcp.f32 %v721_v10  ;;  %v766_v17 = vand.u32 2147483648, %v721_v10  ;;  %v764_v19 = vand.u32 2147483647, %v721_v10  ;;  %vm760_vm15 = vweird.f32 %v721_v10 }
 0x38c   :  { %v767_v20 = vor.u32 1.1754944e-38, %v766_v17  ;;  %vm765_vm1 = vcmp.eq.f32.partialorder %v764_v19, 8.507059e+37 }
 0x390   :  { %v2444_v11 = vpop.eup %2443 }
 0x391   :  { %v756_v13 = vmul.f32 %v2444_v11, %v721_v10  ;;  %vm761_vm14 = vweird.f32 %v2444_v11 }
 0x392   :  { %vm762_vm0 = vmor %vm760_vm15, %vm761_vm14 }
 0x393   :  { %v757_v14 = vsub.f32 1.0, %v756_v13 }
 0x395   :  { %v758_v18 = vmul.f32 %v2444_v11, %v757_v14 }
 0x397   :  { %v759_v15 = vadd.f32 %v2444_v11, %v758_v18 }
 0x399   :  { %v763_v21 = vsel %vm762_vm0, %v2444_v11, %v759_v15 }
 0x39a   :  { %v768_v22 = vsel %vm765_vm1, %v767_v20, %v763_v21 }
 0x39b   :  { %v769_v24 = vmul.f32 %v2960_v23, %v768_v22 }
 0x39d   :  { %v861_v25 = vpack.c.bf16 %v769_v24, %v769_v24 }
 0x39f   :  { %1978 = vmatmul.msk.bf16.vlgmr.msrb.gmra.mxu2 %vm667_vm9, %v861_v25 }
 0x3ae   :  { %v724_v33 = vpop.xlane.xlu1 %723 }
 0x3af   :  { %2445 = vrcp.f32 %v724_v33  ;;  %v781_v30 = vand.u32 2147483648, %v724_v33  ;;  %v779_v35 = vand.u32 2147483647, %v724_v33  ;;  %vm775_vm3 = vweird.f32 %v724_v33 }
 0x3b1   :  { %v782_v38 = vor.u32 1.1754944e-38, %v781_v30  ;;  %vm780_vm5 = vcmp.eq.f32.partialorder %v779_v35, 8.507059e+37 }
 0x3b5   :  { %v2446_v26 = vpop.eup %2445 }
 0x3b6   :  { %v771_v27 = vmul.f32 %v2446_v26, %v724_v33  ;;  %v730_v28 = vpop.xlane.xlu1 %729  ;;  %vm776_vm2 = vweird.f32 %v2446_v26 }
 0x3b7   :  { %2447 = vrcp.f32 %v730_v28  ;;  %vm777_vm4 = vmor %vm775_vm3, %vm776_vm2  ;;  %v811_v48 = vand.u32 2147483648, %v730_v28  ;;  %vm805_vm10 = vweird.f32 %v730_v28  ;;  %v809_v49 = vand.u32 2147483647, %v730_v28 }
 0x3b8   :  { %v772_v29 = vsub.f32 1.0, %v771_v27 }
 0x3b9   :  { %v812_v54 = vor.u32 1.1754944e-38, %v811_v48  ;;  %vm810_vm12 = vcmp.eq.f32.partialorder %v809_v49, 8.507059e+37 }
 0x3ba   :  { %v773_v32 = vmul.f32 %v2446_v26, %v772_v29 }
 0x3bc   :  { %v774_v36 = vadd.f32 %v2446_v26, %v773_v32 }
 0x3bd   :  { %v2448_v37 = vpop.eup %2447 }
 0x3be   :  { %v778_v23 = vsel %vm777_vm4, %v2446_v26, %v774_v36  ;;  %v801_v39 = vmul.f32 %v2448_v37, %v730_v28  ;;  %vm806_vm6 = vweird.f32 %v2448_v37 }
 0x3bf   :  { %v783_v40 = vsel %vm780_vm5, %v782_v38, %v778_v23  ;;  %vm807_vm11 = vmor %vm805_vm10, %vm806_vm6 }
 0x3c0   :  { %v784_v41 = vmul.f32 %v2964_v31, %v783_v40  ;;  %v802_v43 = vsub.f32 1.0, %v801_v39  ;;  %v3004_v44 = vpop.xlane.xlu2 %726 }
 0x3c1   :  { %v796_v26 = vand.u32 2147483648, %v3004_v44  ;;  %vm790_vm4 = vweird.f32 %v3004_v44  ;;  %v794_v28 = vand.u32 2147483647, %v3004_v44 }
 0x3c2   :  { %v803_v45 = vmul.f32 %v2448_v37, %v802_v43  ;;  %v862_v46 = vpack.c.bf16 %v784_v41, %v784_v41 }
 0x3c4   :  { %1979 = vmatmul.msk.bf16.vlgmr.msra.gmra.mxu3 %vm667_vm9, %v862_v46  ;;  %v804_v47 = vadd.f32 %v2448_v37, %v803_v45 }
 0x3c6   :  { %v808_v53 = vsel %vm807_vm11, %v2448_v37, %v804_v47  ;;  %v797_v37 = vor.u32 1.1754944e-38, %v796_v26  ;;  %vm795_vm11 = vcmp.eq.f32.partialorder %v794_v28, 8.507059e+37 }
 0x3c7   :  { %v813_v55 = vsel %vm810_vm12, %v812_v54, %v808_v53 }
 0x3c8   :  { %v736_v51 = vpop.xlane.xlu0 %735  ;;  %v503_v52 = vpop.permute.xlu2 %502  ;;  %v814_v57 = vmul.f32 %v2968_v34, %v813_v55 }
 0x3c9   :  { %2449 = vrcp.f32 %v736_v51  ;;  %v987_v31 = vsel %vm871_vm8, %v503_v52, 0  ;;  %v841_v3 = vand.u32 2147483648, %v736_v51  ;;  %v839_v6 = vand.u32 2147483647, %v736_v51 }
 0x3ca   :  { %2451 = vrcp.f32 %v3004_v44  ;;  %996 = vmatpush.bf16.msrb.mxu3 %v987_v31  ;;  %v864_v16 = vpack.c.bf16 %v814_v57, %v814_v57  ;;  %vm835_vm14 = vweird.f32 %v736_v51 }
 0x3cb   :  { %v842_v8 = vor.u32 1.1754944e-38, %v841_v3  ;;  %vm840_vm0 = vcmp.eq.f32.partialorder %v839_v6, 8.507059e+37 }
 0x3cf   :  { %v2450_v56 = vpop.eup %2449 }
 0x3d0   :  { %v2452_v58 = vpop.eup %2451  ;;  %v831_v59 = vmul.f32 %v2450_v56, %v736_v51  ;;  %v499_v12 = vpop.permute.xlu2 %498  ;;  %vm836_vm13 = vweird.f32 %v2450_v56 }
 0x3d1   :  { %v949_v60 = vsel %vm871_vm8, %v499_v12, 0  ;;  %v786_v63 = vmul.f32 %v2452_v58, %v3004_v44  ;;  %vm837_vm15 = vmor %vm835_vm14, %vm836_vm13  ;;  %vm791_vm2 = vweird.f32 %v2452_v58 }
 0x3d2   :  { %v832_v61 = vsub.f32 1.0, %v831_v59  ;;  %958 = vmatpush.bf16.msra.mxu1 %v949_v60  ;;  %v733_v62 = vpop.xlane.xlu1 %732  ;;  %vm792_vm6 = vmor %vm790_vm4, %vm791_vm2 }
 0x3d3   :  { %2453 = vrcp.f32 %v733_v62  ;;  %v787_v34 = vsub.f32 1.0, %v786_v63  ;;  %v826_v21 = vand.u32 2147483648, %v733_v62  ;;  %v824_v25 = vand.u32 2147483647, %v733_v62 }
 0x3d4   :  { %v833_v4 = vmul.f32 %v2450_v56, %v832_v61  ;;  %vm820_vm3 = vweird.f32 %v733_v62 }
 0x3d5   :  { %1981 = vmatmul.msk.bf16.vlgmr.msra.gmra.mxu1 %vm667_vm9, %v864_v16  ;;  %v788_v19 = vmul.f32 %v2452_v58, %v787_v34  ;;  %v827_v29 = vor.u32 1.1754944e-38, %v826_v21  ;;  %vm825_vm10 = vcmp.eq.f32.partialorder %v824_v25, 8.507059e+37 }
 0x3d6   :  { %v834_v7 = vadd.f32 %v2450_v56, %v833_v4 }
 0x3d7   :  { %v789_v33 = vadd.f32 %v2452_v58, %v788_v19  ;;  %v2298_v19 = vld [vmem:[#allocation10 + $0x8] sm:$0xff] }
 0x3d8   :  { %v838_v10 = vsel %vm837_vm15, %v2450_v56, %v834_v7 }
 0x3d9   :  { %v2454_v11 = vpop.eup %2453  ;;  %v843_v13 = vsel %vm840_vm0, %v842_v8, %v838_v10  ;;  %v793_v32 = vsel %vm792_vm6, %v2452_v58, %v789_v33  ;;  %v2304_v10 = vld [vmem:[#allocation10 + $0x38] sm:$0xff] }
 0x3da   :  { %v844_v14 = vmul.f32 %v2977_v50, %v843_v13  ;;  %v816_v17 = vmul.f32 %v2454_v11, %v733_v62  ;;  %v739_v18 = vpop.xlane.xlu0 %738  ;;  %vm821_vm1 = vweird.f32 %v2454_v11  ;;  %v798_v39 = vsel %vm795_vm11, %v797_v37, %v793_v32  ;;  %1118 = vmatpush.bf16.msrb.mxu1 %v2304_v10  ;;  %v2302_v13 = vld [vmem:[#allocation10 + $0x28] sm:$0xff] }
 0x3db   :  { %2455 = vrcp.f32 %v739_v18  ;;  %vm822_vm5 = vmor %vm820_vm3, %vm821_vm1  ;;  %v799_v43 = vmul.f32 %v2972_v42, %v798_v39  ;;  %vm850_vm13 = vweird.f32 %v739_v18  ;;  %v854_v52 = vand.u32 2147483647, %v739_v18  ;;  %v2099_v10 = vld [vmem:[#allocation16 + $0xa0] sm:$0xf] }
 0x3dc   :  { %v817_v15 = vsub.f32 1.0, %v816_v17  ;;  %v866_v20 = vpack.c.bf16 %v844_v14, %v844_v14  ;;  %v2301_v14 = vld [vmem:[#allocation10 + $0x20] sm:$0xff]  ;;  %v2300_v17 = vld [vmem:[#allocation10 + $0x18] sm:$0xff] }
 0x3dd   :  { %v3014_v22 = vpop.f32.mrf.mxu1  ;;  %v863_v48 = vpack.c.bf16 %v799_v43, %v799_v43  ;;  %vm855_vm15 = vcmp.eq.f32.partialorder %v854_v52, 8.507059e+37  ;;  %v2335_v52 = vld [vmem:[#allocation16 + $0xec] sm:$0xf0] }
 0x3de   :  { %v818_v24 = vmul.f32 %v2454_v11, %v817_v15  ;;  %1983 = vmatmul.msk.bf16.vlgmr.msrb.gmra.mxu3 %vm667_vm9, %v866_v20  ;;  %v2297_v15 = vld [vmem:[#allocation10] sm:$0xff] }
 0x3e0   :  { %v819_v27 = vadd.f32 %v2454_v11, %v818_v24 }
 0x3e1   :  { %v2456_v50 = vpop.eup %2455 }
 0x3e2   :  { %v823_v30 = vsel %vm822_vm5, %v2454_v11, %v819_v27  ;;  %v846_v36 = vmul.f32 %v2456_v50, %v739_v18  ;;  %vm851_vm12 = vweird.f32 %v2456_v50  ;;  %v2303_v11 = vld [vmem:[#allocation10 + $0x30] sm:$0xff] }
 0x3e3   :  { %v828_v35 = vsel %vm825_vm10, %v827_v29, %v823_v30  ;;  %vm852_vm14 = vmor %vm850_vm13, %vm851_vm12  ;;  %1119 = vmatpush.bf16.msrb.mxu1 %v2303_v11  ;;  %v2327_v11 = vld [vmem:[#allocation16 + $0xac] sm:$0xf0] }
 0x3e4   :  { %v829_v38 = vmul.f32 %v2983_v0, %v828_v35  ;;  %v847_v41 = vsub.f32 1.0, %v846_v36  ;;  %v856_v0 = vand.u32 2147483648, %v739_v18  ;;  %v2299_v18 = vld [vmem:[#allocation10 + $0x10] sm:$0xff] }
 0x3e5   :  { %v886_v23 = vpop.f32.mrf.mxu1 }
 0x3e6   :  { %v865_v40 = vpack.c.bf16 %v829_v38, %v829_v38  ;;  %v848_v45 = vmul.f32 %v2456_v50, %v847_v41  ;;  %v857_v42 = vor.u32 1.1754944e-38, %v856_v0  ;;  %v2415_v23 = vld [vmem:[#allocation11] ss:$0 sm:$0xff]  ;;  %v2131_v0 = vld [vmem:[#allocation16 + $0xe0] sm:$0xf] }
 0x3e7   :  { %1120 = vmatpush.bf16.msrb.mxu1 %v2302_v13  ;;  %v2325_v13 = vld [vmem:[#allocation16 + $0xa4] sm:$0xf] }
 0x3e8   :  { %1982 = vmatmul.msk.bf16.vlgmr.msra.gmra.mxu2 %vm667_vm9, %v865_v40  ;;  %v849_v51 = vadd.f32 %v2456_v50, %v848_v45 }
 0x3ea   :  { %v497_v44 = vpop.permute.xlu1 %496  ;;  %v853_v53 = vsel %vm852_vm14, %v2456_v50, %v849_v51 }
 0x3eb   :  { %v930_v46 = vsel %vm871_vm8, %v497_v44, 0  ;;  %v858_v54 = vsel %vm855_vm15, %v857_v42, %v853_v53  ;;  %1121 = vmatpush.bf16.msrb.mxu1 %v2301_v14  ;;  %v2333_v53 = vld [vmem:[#allocation16 + $0xe4] sm:$0xf]  ;;  %v2132_v42 = vor.u32 %v2335_v52, %v2131_v0  ;;  %v2100_v14 = vor.u32 %v2327_v11, %v2099_v10  ;;  %v2051_v52 = vld [vmem:[#allocation16 + $0x40] sm:$0xf] }
 0x3ec   :  { %939 = vmatpush.bf16.msrb.mxu0 %v930_v46  ;;  %v859_v31 = vmul.f32 %v2988_v5, %v858_v54  ;;  %v2133_v54 = vld [vmem:[#allocation16 + $0xf0] sm:$0xf0]  ;;  %v2310_v10 = vld [vmem:[#allocation16 + $0x2c] sm:$0xf]  ;;  %v2045_v11 = vld [vmem:[#allocation16 + $0x38] sm:$0xf0] }
 0x3ed   :  { %v505_v47 = vpop.permute.xlu0 %504  ;;  %1395 = vmatpush.bf16.msrb.mxu2 %v2132_v42  ;;  %v2313_v42 = vld [vmem:[#allocation16 + $0x44] sm:$0xf] }
 0x3ee   :  { %v1006_v49 = vsel %vm871_vm8, %v505_v47, 0  ;;  %v867_v55 = vpack.c.bf16 %v859_v31, %v859_v31  ;;  %vm1047_vm8 = vcmask 523264   ;;  %v2139_v31 = vld [vmem:[#allocation16 + $0xe8] sm:$0xf] }
 0x3ef   :  { %1980 = vmatmul.msk.bf16.vlgmr.msrb.gmra.mxu0 %vm667_vm9, %v863_v48  ;;  %1122 = vmatpush.bf16.msrb.mxu1 %v2300_v17  ;;  %v2101_v17 = vld [vmem:[#allocation16 + $0xb0] sm:$0xf0] }
 0x3f0   :  { %1015 = vmatpush.bf16.msra.mxu0 %v1006_v49 }
 0x3f3   :  { %1123 = vmatpush.bf16.msrb.mxu1 %v2299_v18  ;;  %v2107_v18 = vld [vmem:[#allocation16 + $0xa8] sm:$0xf] }
 0x3f7   :  { %1124 = vmatpush.bf16.msrb.mxu1 %v2298_v19  ;;  %v2328_v19 = vld [vmem:[#allocation16 + $0xb4] sm:$0xf0] }
 0x3fb   :  { %1125 = vmatpush.bf16.msrb.mxu1 %v2297_v15  ;;  %v2104_v15 = vor.u32 %v2325_v13, %v2101_v17  ;;  %v2019_v13 = vld [vmem:[#allocation16] sm:$0xf]  ;;  %v2307_v17 = vld [vmem:[#allocation16 + $0xc] sm:$0xf0] }
 0x3ff   :  { %1984 = vmatmul.msk.bf16.vlgmr.msra.gmra.mxu0 %vm667_vm9, %v867_v55  ;;  %vm1050_vm9 = vcmask 785408   ;;  %v2336_v55 = vld [vmem:[#allocation16 + $0xf4] sm:$0xf0] }
 0x422   :  { %v903_v56 = vpop.f32.mrf.mxu2 }
 0x42a   :  { %v905_v57 = vpop.f32.mrf.mxu2 }
 0x42b   :  { %v2140_v57 = vor.u32 %v2336_v55, %v2139_v31  ;;  %v2053_v31 = vld [vmem:[#allocation16 + $0x50] sm:$0xf0]  ;;  %v2059_v55 = vld [vmem:[#allocation16 + $0x48] sm:$0xf] }
 0x42d   :  { %1423 = vmatpush.bf16.msrb.mxu0 %v2140_v57  ;;  %v2056_v57 = vor.u32 %v2313_v42, %v2053_v31 }
 0x447   :  { %v922_v58 = vpop.f32.mrf.mxu3 }
 0x44f   :  { %v924_v59 = vpop.f32.mrf.mxu3 }
 0x450   :  { %v2141_v59 = vld [vmem:[#allocation16 + $0xf8] sm:$0xf0] }
 0x452   :  { %v960_v12 = vpop.f32.mrf.mxu1 }
 0x45a   :  { %v962_v60 = vpop.f32.mrf.mxu1 }
 0x45b   :  { %v2115_v60 = vld [vmem:[#allocation16 + $0xc0] sm:$0xf] }
 0x461   :  { %v998_v61 = vpop.f32.mrf.mxu3 }
 0x469   :  { %v1000_v62 = vpop.f32.mrf.mxu3 }
 0x46a   :  { %v2329_v62 = vld [vmem:[#allocation16 + $0xc4] sm:$0xf] }
 0x46b   :  { %v979_v63 = vpop.f32.mrf.mxu2 }
 0x46c   :  { %v2403_v3 = vpack.i.bf16 %v979_v63, %v960_v12  ;;  %v941_v16 = vpop.f32.mrf.mxu0 }
 0x46d   :  { %v2398_v4 = vpack.i.bf16 %v941_v16, %v922_v58  ;;  %v2334_v58 = vld [vmem:[#allocation16 + $0xec] sm:$0xf]  ;;  %v2123_v16 = vld [vmem:[#allocation16 + $0xc8] sm:$0xf] }
 0x46e   :  { %2404 = vrot.lane.b32.xlu2 %v2403_v3, %s2762_s18  ;;  %v2144_v12 = vor.u32 %v2334_v58, %v2141_v59  ;;  %v2117_v3 = vld [vmem:[#allocation16 + $0xd0] sm:$0xf0]  ;;  %v2314_v59 = vld [vmem:[#allocation16 + $0x4c] sm:$0xf] }
 0x46f   :  { %2399 = vrot.lane.b32.xlu1 %v2398_v4, %s2773_s20  ;;  %v2332_v4 = vld [vmem:[#allocation16 + $0xd4] sm:$0xf0] }
 0x470   :  { %1437 = vmatpush.bf16.msra.mxu1 %v2144_v12  ;;  %v2061_v12 = vld [vmem:[#allocation16 + $0x58] sm:$0xf0] }
 0x473   :  { %v981_v5 = vpop.f32.mrf.mxu2 }
 0x474   :  { %v943_v6 = vpop.f32.mrf.mxu0  ;;  %v2120_v5 = vor.u32 %v2329_v62, %v2117_v3  ;;  %v2311_v62 = vld [vmem:[#allocation16 + $0x2c] sm:$0xf0] }
 0x475   :  { %v2124_v6 = vor.u32 %v2332_v4, %v2123_v16  ;;  %v2037_v4 = vld [vmem:[#allocation16 + $0x30] sm:$0xf0] }
 0x477   :  { %1424 = vmatpush.bf16.msrb.mxu0 %v2124_v6  ;;  %v2312_v6 = vld [vmem:[#allocation16 + $0x34] sm:$0xf0] }
 0x47c   :  { %v1017_v7 = vpop.f32.mrf.mxu0 }
 0x47d   :  { %v2408_v34 = vpack.i.bf16 %v1017_v7, %v998_v61  ;;  %v2331_v61 = vld [vmem:[#allocation16 + $0xcc] sm:$0xf0]  ;;  %v2330_v7 = vld [vmem:[#allocation16 + $0xcc] sm:$0xf] }
 0x47e   :  { %v2116_v63 = vor.u32 %v2331_v61, %v2115_v60  ;;  %v2064_v60 = vor.u32 %v2314_v59, %v2061_v12  ;;  %v2035_v61 = vld [vmem:[#allocation16 + $0x20] sm:$0xf]  ;;  %v2358_v59 = vld [vmem:[#allocation17 + $0xa8] sm:$0xff] }
 0x47f   :  { %2409 = vrot.lane.b32.xlu0 %v2408_v34, %s2772_s4  ;;  %v2125_v34 = vld [vmem:[#allocation16 + $0xd8] sm:$0xf0]  ;;  %v2036_v16 = vor.u32 %v2311_v62, %v2035_v61  ;;  %v2366_v12 = vld [vmem:[#allocation17 + $0xe8] sm:$0xff]  ;;  %v2351_v61 = vld [vmem:[#allocation17 + $0x70] sm:$0xff] }
 0x480   :  { %1396 = vmatpush.bf16.msrb.mxu2 %v2116_v63  ;;  %v2309_v63 = vld [vmem:[#allocation16 + $0x24] sm:$0xf] }
 0x481   :  { %v2357_v62 = vld [vmem:[#allocation17 + $0xa0] sm:$0xff] }
 0x484   :  { %v1019_v8 = vpop.f32.mrf.mxu0  ;;  %1397 = vmatpush.bf16.msrb.mxu2 %v2100_v14  ;;  %v2048_v14 = vor.u32 %v2310_v10, %v2045_v11  ;;  %v2340_v10 = vld [vmem:[#allocation17 + $0x18] sm:$0xff] }
 0x485   :  { %v2128_v8 = vor.u32 %v2330_v7, %v2125_v34  ;;  %v2040_v34 = vor.u32 %v2309_v63, %v2037_v4  ;;  %v2365_v63 = vld [vmem:[#allocation17 + $0xe0] sm:$0xff]  ;;  %v2356_v4 = vld [vmem:[#allocation17 + $0x98] sm:$0xff] }
 0x486   :  { %v2348_v11 = vld [vmem:[#allocation17 + $0x58] sm:$0xff] }
 0x487   :  { %1438 = vmatpush.bf16.msra.mxu1 %v2128_v8 }
 0x4c8   :  { %v2405_v25 = vpop.permute.xlu2 %2404 }
 0x4c9   :  { %v2407_v27 = vunpack.i.h.bf16 %v2405_v25  ;;  %v2406_v50 = vunpack.i.l.bf16 %v2405_v25 }
 0x4e1   :  { %v2400_v20 = vpop.permute.xlu1 %2399 }
 0x4e2   :  { %v2402_v21 = vunpack.i.h.bf16 %v2400_v20  ;;  %v2401_v24 = vunpack.i.l.bf16 %v2400_v20  ;;  %v2108_v20 = vor.u32 %v2328_v19, %v2107_v18  ;;  %v2305_v18 = vld [vmem:[#allocation16 + $0x4] sm:$0xf]  ;;  %v2021_v19 = vld [vmem:[#allocation16 + $0x10] sm:$0xf0] }
 0x4e4   :  { %v1046_v33 = vsel %vm506_vm7, %v903_v56, %v2402_v21  ;;  %v1045_v26 = vsel %vm506_vm7, %v3014_v22, %v2401_v24  ;;  %v2136_v56 = vor.u32 %v2333_v53, %v2133_v54  ;;  %v2326_v21 = vld [vmem:[#allocation16 + $0xac] sm:$0xf]  ;;  %v2109_v24 = vld [vmem:[#allocation16 + $0xb8] sm:$0xf0]  ;;  %1425 = vmatpush.bf16.msrb.mxu0 %v2108_v20  ;;  %v2315_v53 = vld [vmem:[#allocation16 + $0x4c] sm:$0xf0]  ;;  %v2020_v20 = vor.u32 %v2307_v17, %v2019_v13 }
 0x4e5   :  { %v1048_v32 = vsel %vm1047_vm8, %v1045_v26, %v2406_v50  ;;  %v1049_v35 = vsel %vm1047_vm8, %v1046_v33, %v2407_v27  ;;  %v2112_v25 = vor.u32 %v2326_v21, %v2109_v24  ;;  %v2083_v33 = vld [vmem:[#allocation16 + $0x80] sm:$0xf]  ;;  %v2323_v26 = vld [vmem:[#allocation16 + $0x8c] sm:$0xf0]  ;;  %v2321_v27 = vld [vmem:[#allocation16 + $0x84] sm:$0xf]  ;;  %v2052_v54 = vor.u32 %v2315_v53, %v2051_v52 }
 0x4e6   :  { %1409 = vmatpush.bf16.msra.mxu3 %v2136_v56  ;;  %v2084_v50 = vor.u32 %v2323_v26, %v2083_v33  ;;  %v2316_v56 = vld [vmem:[#allocation16 + $0x54] sm:$0xf0]  ;;  %v2024_v21 = vor.u32 %v2305_v18, %v2021_v19  ;;  %v2027_v24 = vld [vmem:[#allocation16 + $0x8] sm:$0xf]  ;;  %v2306_v26 = vld [vmem:[#allocation16 + $0xc] sm:$0xf] }
 0x4e7   :  { %1439 = vmatpush.bf16.msra.mxu1 %v2112_v25  ;;  %v2060_v58 = vor.u32 %v2316_v56, %v2059_v55  ;;  %v2308_v25 = vld [vmem:[#allocation16 + $0x14] sm:$0xf0]  ;;  %v2417_v52 = vld [vmem:[#allocation14] ss:$0 sm:$0xff]  ;;  %v2354_v13 = vld [vmem:[#allocation17 + $0x88] sm:$0xff] }
 0x4e8   :  { %1398 = vmatpush.bf16.msrb.mxu2 %v2084_v50  ;;  %v2028_v33 = vor.u32 %v2308_v25, %v2027_v24  ;;  %v2360_v55 = vld [vmem:[#allocation17 + $0xb8] sm:$0xff]  ;;  %v3061_v17 = vld [vmem:[%s3116_s10] sm:$0xf] }
 0x4e9   :  { %v2368_v56 = vld [vmem:[#allocation17 + $0xf8] sm:$0xff]  ;;  %v2339_v18 = vld [vmem:[#allocation17 + $0x10] sm:$0xff]  ;;  %v1230_v24 = vperm.slane %v3061_v17, 3  ;;  %v2338_v25 = vld [vmem:[#allocation17 + $0x8] sm:$0xff] }
 0x4ea   :  { %1410 = vmatpush.bf16.msra.mxu3 %v2120_v5  ;;  %v2043_v5 = vld [vmem:[#allocation16 + $0x28] sm:$0xf]  ;;  %v2347_v19 = vld [vmem:[#allocation17 + $0x50] sm:$0xff] }
 0x4eb   :  { %v2044_v8 = vor.u32 %v2312_v6, %v2043_v5  ;;  %v2364_v5 = vld [vmem:[#allocation17 + $0xd8] sm:$0xff]  ;;  %v2341_v6 = vld [vmem:[#allocation17 + $0x20] sm:$0xff] }
 0x4ee   :  { %1411 = vmatpush.bf16.msra.mxu3 %v2104_v15 }
 0x4f1   :  { %v2410_v28 = vpop.permute.xlu0 %2409 }
 0x4f2   :  { %v2412_v29 = vunpack.i.h.bf16 %v2410_v28  ;;  %v2411_v30 = vunpack.i.l.bf16 %v2410_v28  ;;  %v2085_v28 = vld [vmem:[#allocation16 + $0x90] sm:$0xf0] }
 0x4f4   :  { %v1052_v36 = vsel %vm1050_vm9, %v1049_v35, %v2412_v29  ;;  %v1051_v37 = vsel %vm1050_vm9, %v1048_v32, %v2411_v30  ;;  %v2091_v29 = vld [vmem:[#allocation16 + $0x88] sm:$0xf]  ;;  %v2324_v30 = vld [vmem:[#allocation16 + $0x94] sm:$0xf0]  ;;  %v2088_v32 = vor.u32 %v2321_v27, %v2085_v28  ;;  %v2029_v27 = vld [vmem:[#allocation16 + $0x18] sm:$0xf0] }
 0x4f5   :  { %v1053_v38 = vpack.c.bf16 %v1052_v36, %v1051_v37  ;;  %v2092_v35 = vor.u32 %v2324_v30, %v2091_v29  ;;  %v2322_v36 = vld [vmem:[#allocation16 + $0x8c] sm:$0xf]  ;;  %v2093_v37 = vld [vmem:[#allocation16 + $0x98] sm:$0xf0]  ;;  %v2032_v50 = vor.u32 %v2306_v26, %v2029_v27 }
 0x4f6   :  { %1412 = vmatpush.bf16.msra.mxu3 %v2088_v32 }
 0x4f7   :  { %1126 = vmatmul.bf16.vlgmr.msrb.gmra.mxu1 %v1053_v38  ;;  %v2096_v38 = vor.u32 %v2322_v36, %v2093_v37  ;;  %1426 = vmatpush.bf16.msrb.mxu0 %v2092_v35 }
 0x4f9   :  { %1440 = vmatpush.bf16.msra.mxu1 %v2096_v38 }
 0x574   :  { %v1127_v39 = vpop.f32.mrf.mxu1 }
 0x575   :  { %v1132_v40 = vadd.f32 %v2884_v1, %v1127_v39  ;;  %v2319_v39 = vld [vmem:[#allocation16 + $0x6c] sm:$0xf0] }
 0x577   :  { %v3035_v41 = vadd.f32 %v2415_v23, %v1132_v40  ;;  %v2317_v40 = vld [vmem:[#allocation16 + $0x64] sm:$0xf] }
 0x579   :  { %1142 = vadd.xlane.f32.xlu1 %v3035_v41 }
 0x57c   :  { %v1129_v22 = vpop.f32.mrf.mxu1 }
 0x57d   :  { %v1133_v43 = vadd.f32 %v2887_v2, %v1129_v22 }
 0x57f   :  { %v3039_v44 = vadd.f32 %v2415_v23, %v1133_v43  ;;  %v2067_v23 = vld [vmem:[#allocation16 + $0x60] sm:$0xf]  ;;  %v2069_v43 = vld [vmem:[#allocation16 + $0x70] sm:$0xf0] }
 0x580   :  { %v2068_v22 = vor.u32 %v2319_v39, %v2067_v23 }
 0x581   :  { %1144 = vadd.xlane.f32.xlu2 %v3039_v44 }
 0x582   :  { %1399 = vmatpush.bf16.msrb.mxu2 %v2068_v22 }
 0x586   :  { %1400 = vmatpush.bf16.msrb.mxu2 %v2052_v54 }
 0x58a   :  { %1401 = vmatpush.bf16.msrb.mxu2 %v2036_v16  ;;  %v2350_v16 = vld [vmem:[#allocation17 + $0x68] sm:$0xff] }
 0x58e   :  { %1402 = vmatpush.bf16.msrb.mxu2 %v2020_v20  ;;  %v2361_v20 = vld [vmem:[#allocation17 + $0xc0] sm:$0xff] }
 0x5ec   :  { %v1143_v45 = vpop.xlane.xlu1 %1142 }
 0x5ed   :  { %v1146_v46 = vmul.f32 %v1143_v45, %v2890_v9  ;;  %v2075_v45 = vld [vmem:[#allocation16 + $0x68] sm:$0xf] }
 0x5ef   :  { %v3044_v47 = vsub.f32 %v3035_v41, %v1146_v46  ;;  %v2320_v46 = vld [vmem:[#allocation16 + $0x74] sm:$0xf0] }
 0x5f1   :  { %v1150_v1 = vmul.f32 %v3044_v47, %v3044_v47 }
 0x5f3   :  { %1152 = vadd.xlane.f32.xlu0 %v1150_v1  ;;  %v2072_v1 = vor.u32 %v2317_v40, %v2069_v43 }
 0x5f4   :  { %v1145_v48 = vpop.xlane.xlu2 %1144 }
 0x5f5   :  { %v1147_v49 = vmul.f32 %v1145_v48, %v2890_v9  ;;  %v2076_v48 = vor.u32 %v2320_v46, %v2075_v45  ;;  %1413 = vmatpush.bf16.msra.mxu3 %v2072_v1  ;;  %v2416_v1 = vld [vmem:[#allocation13] ss:$0 sm:$0xff] }
 0x5f7   :  { %v3050_v51 = vsub.f32 %v3039_v44, %v1147_v49  ;;  %v2318_v49 = vld [vmem:[#allocation16 + $0x6c] sm:$0xf]  ;;  %1427 = vmatpush.bf16.msrb.mxu0 %v2076_v48 }
 0x5f9   :  { %v1151_v2 = vmul.f32 %v3050_v51, %v3050_v51  ;;  %1414 = vmatpush.bf16.msra.mxu3 %v2056_v57  ;;  %v2367_v57 = vld [vmem:[#allocation17 + $0xf0] sm:$0xff] }
 0x5fb   :  { %1154 = vadd.xlane.f32.xlu1 %v1151_v2  ;;  %v2077_v2 = vld [vmem:[#allocation16 + $0x78] sm:$0xf0]  ;;  %1428 = vmatpush.bf16.msrb.mxu0 %v2060_v58 }
 0x5fc   :  { %v2080_v0 = vor.u32 %v2318_v49, %v2077_v2  ;;  %v2344_v58 = vld [vmem:[#allocation17 + $0x38] sm:$0xff] }
 0x5fd   :  { %1415 = vmatpush.bf16.msra.mxu3 %v2040_v34  ;;  %1787 = vmatpush.bf16.msra.mxu2 %v2344_v58  ;;  %v2355_v34 = vld [vmem:[#allocation17 + $0x90] sm:$0xff] }
 0x5fe   :  { %1441 = vmatpush.bf16.msra.mxu1 %v2080_v0 }
 0x5ff   :  { %1429 = vmatpush.bf16.msrb.mxu0 %v2044_v8  ;;  %v2363_v8 = vld [vmem:[#allocation17 + $0xd0] sm:$0xff] }
 0x601   :  { %1416 = vmatpush.bf16.msra.mxu3 %v2024_v21  ;;  %v1229_v21 = vperm.slane %v3061_v17, 2 }
 0x602   :  { %1442 = vmatpush.bf16.msra.mxu1 %v2064_v60  ;;  %v2343_v60 = vld [vmem:[#allocation17 + $0x30] sm:$0xff] }
 0x603   :  { %1430 = vmatpush.bf16.msrb.mxu0 %v2028_v33  ;;  %1788 = vmatpush.bf16.msra.mxu2 %v2343_v60  ;;  %v2346_v33 = vld [vmem:[#allocation17 + $0x48] sm:$0xff] }
 0x606   :  { %1443 = vmatpush.bf16.msra.mxu1 %v2048_v14  ;;  %v2362_v14 = vld [vmem:[#allocation17 + $0xc8] sm:$0xff] }
 0x607   :  { %1815 = vmatpush.bf16.msra.mxu0 %v2360_v55 }
 0x60a   :  { %1444 = vmatpush.bf16.msra.mxu1 %v2032_v50 }
 0x60e   :  { %1829 = vmatpush.bf16.msrb.mxu1 %v2368_v56 }
 0x612   :  { %1830 = vmatpush.bf16.msrb.mxu1 %v2367_v57 }
 0x616   :  { %1831 = vmatpush.bf16.msrb.mxu1 %v2366_v12 }
 0x61a   :  { %1832 = vmatpush.bf16.msrb.mxu1 %v2365_v63 }
 0x61e   :  { %1833 = vmatpush.bf16.msrb.mxu1 %v2364_v5 }
 0x622   :  { %1834 = vmatpush.bf16.msrb.mxu1 %v2363_v8 }
 0x626   :  { %1835 = vmatpush.bf16.msrb.mxu1 %v2362_v14 }
 0x62a   :  { %1836 = vmatpush.bf16.msrb.mxu1 %v2361_v20 }
 0x666   :  { %v1153_v3 = vpop.xlane.xlu0 %1152 }
 0x667   :  { %v1156_v7 = vmul.f32 %v1153_v3, %v2890_v9  ;;  %v2342_v3 = vld [vmem:[#allocation17 + $0x28] sm:$0xff] }
 0x668   :  { %1789 = vmatpush.bf16.msra.mxu2 %v2342_v3 }
 0x669   :  { %v1158_v15 = vadd.f32 1e-05, %v1156_v7  ;;  %v2349_v7 = vld [vmem:[#allocation17 + $0x60] sm:$0xff] }
 0x66b   :  { %2457 = vrsqrt.f32 %v1158_v15  ;;  %vm1166_vm0 = vweird.f32 %v1158_v15 }
 0x66c   :  { %1790 = vmatpush.bf16.msra.mxu2 %v2341_v6 }
 0x66e   :  { %v1155_v28 = vpop.xlane.xlu1 %1154 }
 0x66f   :  { %v1157_v29 = vmul.f32 %v1155_v28, %v2890_v9 }
 0x670   :  { %1791 = vmatpush.bf16.msra.mxu2 %v2340_v10 }
 0x671   :  { %v2458_v30 = vpop.eup %2457  ;;  %v1159_v32 = vadd.f32 1e-05, %v1157_v29  ;;  %v1227_v29 = vperm.slane %v3061_v17, 0 }
 0x672   :  { %v1161_v35 = vmul.f32 %v2458_v30, %v1158_v15  ;;  %vm1167_vm7 = vweird.f32 %v2458_v30  ;;  %v2353_v15 = vld [vmem:[#allocation17 + $0x80] sm:$0xff] }
 0x673   :  { %2459 = vrsqrt.f32 %v1159_v32  ;;  %vm1168_vm1 = vmor %vm1166_vm0, %vm1167_vm7  ;;  %vm1176_vm3 = vweird.f32 %v1159_v32 }
 0x674   :  { %v1162_v36 = vmul.f32 %v2458_v30, %v1161_v35  ;;  %1792 = vmatpush.bf16.msra.mxu2 %v2339_v18 }
 0x676   :  { %v1163_v37 = vmul.f32 0.5, %v1162_v36  ;;  %v2337_v36 = vld [vmem:[#allocation17] sm:$0xff] }
 0x678   :  { %v1164_v38 = vsub.f32 1.5, %v1163_v37  ;;  %1793 = vmatpush.bf16.msra.mxu2 %v2338_v25  ;;  %v2345_v37 = vld [vmem:[#allocation17 + $0x40] sm:$0xff] }
 0x679   :  { %v2460_v23 = vpop.eup %2459 }
 0x67a   :  { %v1165_v39 = vmul.f32 %v2458_v30, %v1164_v38  ;;  %v1171_v40 = vmul.f32 %v2460_v23, %v1159_v32  ;;  %vm1177_vm2 = vweird.f32 %v2460_v23 }
 0x67b   :  { %vm1178_vm4 = vmor %vm1176_vm3, %vm1177_vm2 }
 0x67c   :  { %v1172_v22 = vmul.f32 %v2460_v23, %v1171_v40  ;;  %v1169_v43 = vsel %vm1168_vm1, %v2458_v30, %v1165_v39  ;;  %v1228_v30 = vperm.slane %v3061_v17, 1  ;;  %1794 = vmatpush.bf16.msra.mxu2 %v2337_v36 }
 0x67d   :  { %v1180_v9 = vmul.f32 %v1169_v43, %v3044_v47  ;;  %v2359_v47 = vld [vmem:[#allocation17 + $0xb0] sm:$0xff] }
 0x67e   :  { %v1173_v45 = vmul.f32 0.5, %v1172_v22  ;;  %1816 = vmatpush.bf16.msra.mxu0 %v2359_v47 }
 0x67f   :  { %v1185_v0 = vmul.f32 %v2416_v1, %v1180_v9 }
 0x680   :  { %v1174_v46 = vsub.f32 1.5, %v1173_v45 }
 0x681   :  { %v1190_v42 = vadd.f32 %v2417_v52, %v1185_v0 }
 0x682   :  { %v1175_v48 = vmul.f32 %v2460_v23, %v1174_v46  ;;  %1817 = vmatpush.bf16.msra.mxu0 %v2358_v59 }
 0x684   :  { %v1179_v49 = vsel %vm1178_vm4, %v2460_v23, %v1175_v48 }
 0x685   :  { %v1181_v2 = vmul.f32 %v1179_v49, %v3050_v51  ;;  %v2352_v51 = vld [vmem:[#allocation17 + $0x78] sm:$0xff] }
 0x686   :  { %1801 = vmatpush.bf16.msrb.mxu3 %v2352_v51  ;;  %1818 = vmatpush.bf16.msra.mxu0 %v2357_v62 }
 0x687   :  { %v1186_v53 = vmul.f32 %v2416_v1, %v1181_v2 }
 0x689   :  { %v1191_v54 = vadd.f32 %v2417_v52, %v1186_v53 }
 0x68a   :  { %1802 = vmatpush.bf16.msrb.mxu3 %v2351_v61  ;;  %1819 = vmatpush.bf16.msra.mxu0 %v2356_v4 }
 0x68b   :  { %v1192_v31 = vpack.c.bf16 %v1191_v54, %v1190_v42 }
 0x68d   :  { %1403 = vmatmul.bf16.vlgmr.msrb.gmra.mxu2 %v1192_v31  ;;  %1417 = vmatmul.bf16.vlgmr.msra.gmra.mxu3 %v1192_v31 }
 0x68e   :  { %1431 = vmatmul.bf16.vlgmr.msrb.gmra.mxu0 %v1192_v31  ;;  %1445 = vmatmul.bf16.vlgmr.msra.gmra.mxu1 %v1192_v31 }
 0x68f   :  { %1803 = vmatpush.bf16.msrb.mxu3 %v2350_v16  ;;  %1820 = vmatpush.bf16.msra.mxu0 %v2355_v34 }
 0x693   :  { %1804 = vmatpush.bf16.msrb.mxu3 %v2349_v7  ;;  %1821 = vmatpush.bf16.msra.mxu0 %v2354_v13 }
 0x697   :  { %1805 = vmatpush.bf16.msrb.mxu3 %v2348_v11  ;;  %1822 = vmatpush.bf16.msra.mxu0 %v2353_v15 }
 0x69b   :  { %1806 = vmatpush.bf16.msrb.mxu3 %v2347_v19 }
 0x69f   :  { %1807 = vmatpush.bf16.msrb.mxu3 %v2346_v33 }
 0x6a3   :  { %1808 = vmatpush.bf16.msrb.mxu3 %v2345_v37 }
 0x70b   :  { %v1432_v26 = vpop.f32.mrf.mxu0  ;;  %v1446_v27 = vpop.f32.mrf.mxu1 }
 0x70c   :  { %v3065_v50 = vadd.f32 %v1432_v26, %v1229_v21  ;;  %v3067_v28 = vadd.f32 %v1446_v27, %v1230_v24 }
 0x70e   :  { %v1461_v32 = vmul.f32 0.044715, %v3065_v50  ;;  %v1462_v35 = vmul.f32 0.044715, %v3067_v28 }
 0x710   :  { %v1469_v38 = vmul.f32 %v1461_v32, %v3065_v50  ;;  %v1470_v23 = vmul.f32 %v1462_v35, %v3067_v28  ;;  %v1404_v39 = vpop.f32.mrf.mxu2  ;;  %v1418_v40 = vpop.f32.mrf.mxu3  ;;  %v1453_v35 = vmul.f32 0.5, %v3065_v50 }
 0x711   :  { %v3075_v22 = vadd.f32 %v1404_v39, %v1227_v29  ;;  %v3077_v43 = vadd.f32 %v1418_v40, %v1228_v30 }
 0x712   :  { %v1477_v45 = vmul.f32 %v1469_v38, %v3065_v50  ;;  %v1478_v46 = vmul.f32 %v1470_v23, %v3067_v28  ;;  %v1454_v23 = vmul.f32 0.5, %v3067_v28 }
 0x713   :  { %v1459_v9 = vmul.f32 0.044715, %v3075_v22  ;;  %v1460_v1 = vmul.f32 0.044715, %v3077_v43  ;;  %v1434_v48 = vpop.f32.mrf.mxu0  ;;  %v1448_v49 = vpop.f32.mrf.mxu1 }
 0x714   :  { %v1485_v2 = vadd.f32 %v1477_v45, %v3065_v50  ;;  %v1435_v0 = vadd.f32 %v1434_v48, %v1229_v21  ;;  %v1449_v52 = vadd.f32 %v1448_v49, %v1230_v24  ;;  %v1486_v53 = vadd.f32 %v1478_v46, %v3067_v28 }
 0x715   :  { %v1467_v42 = vmul.f32 %v1459_v9, %v3075_v22  ;;  %v1468_v54 = vmul.f32 %v1460_v1, %v3077_v43 }
 0x716   :  { %v1465_v31 = vmul.f32 0.044715, %v1435_v0  ;;  %v1466_v47 = vmul.f32 0.044715, %v1449_v52  ;;  %v1493_v57 = vmul.f32 0.7978846, %v1485_v2 }
 0x717   :  { %v1475_v55 = vmul.f32 %v1467_v42, %v3075_v22  ;;  %v1476_v56 = vmul.f32 %v1468_v54, %v3077_v43  ;;  %v1494_v12 = vmul.f32 0.7978846, %v1486_v53  ;;  %v1457_v36 = vmul.f32 0.5, %v1435_v0 }
 0x718   :  { %v1473_v58 = vmul.f32 %v1465_v31, %v1435_v0  ;;  %v1406_v51 = vpop.f32.mrf.mxu2  ;;  %v1420_v59 = vpop.f32.mrf.mxu3  ;;  %v1474_v61 = vmul.f32 %v1466_v47, %v1449_v52  ;;  %2461 = vtanh.f32 %v1493_v57  ;;  %v1458_v39 = vmul.f32 0.5, %v1449_v52 }
 0x719   :  { %v1483_v60 = vadd.f32 %v1475_v55, %v3075_v22  ;;  %v1407_v62 = vadd.f32 %v1406_v51, %v1227_v29  ;;  %v1484_v63 = vadd.f32 %v1476_v56, %v3077_v43  ;;  %v1421_v16 = vadd.f32 %v1420_v59, %v1228_v30 }
 0x71a   :  { %v1481_v3 = vmul.f32 %v1473_v58, %v1435_v0  ;;  %v1482_v5 = vmul.f32 %v1474_v61, %v1449_v52  ;;  %2463 = vtanh.f32 %v1494_v12  ;;  %v1451_v31 = vmul.f32 0.5, %v3075_v22  ;;  %v2418_v22 = vld [vmem:[%s3118_s12] ss:$0 sm:$0xff] }
 0x71b   :  { %v1491_v4 = vmul.f32 0.7978846, %v1483_v60  ;;  %v1463_v6 = vmul.f32 0.044715, %v1407_v62  ;;  %v1464_v34 = vmul.f32 0.044715, %v1421_v16 }
 0x71c   :  { %v1489_v7 = vadd.f32 %v1481_v3, %v1435_v0  ;;  %v1490_v8 = vadd.f32 %v1482_v5, %v1449_v52  ;;  %v1492_v11 = vmul.f32 0.7978846, %v1484_v63  ;;  %v1455_v50 = vmul.f32 0.5, %v1407_v62 }
 0x71d   :  { %v1471_v10 = vmul.f32 %v1463_v6, %v1407_v62  ;;  %v1472_v14 = vmul.f32 %v1464_v34, %v1421_v16  ;;  %2465 = vtanh.f32 %v1491_v4  ;;  %v1452_v55 = vmul.f32 0.5, %v3077_v43 }
 0x71e   :  { %v1497_v13 = vmul.f32 0.7978846, %v1489_v7  ;;  %v1498_v17 = vmul.f32 0.7978846, %v1490_v8  ;;  %v2462_v20 = vpop.eup %2461  ;;  %v1456_v28 = vmul.f32 0.5, %v1421_v16 }
 0x71f   :  { %v1479_v18 = vmul.f32 %v1471_v10, %v1407_v62  ;;  %v1480_v19 = vmul.f32 %v1472_v14, %v1421_v16  ;;  %v1509_v27 = vadd.f32 1.0, %v2462_v20 }
 0x720   :  { %2467 = vtanh.f32 %v1497_v13  ;;  %v2464_v24 = vpop.eup %2463 }
 0x721   :  { %v1487_v15 = vadd.f32 %v1479_v18, %v1407_v62  ;;  %2469 = vtanh.f32 %v1498_v17  ;;  %v1488_v21 = vadd.f32 %v1480_v19, %v1421_v16  ;;  %v1510_v30 = vadd.f32 1.0, %v2464_v24 }
 0x722   :  { %2471 = vtanh.f32 %v1492_v11  ;;  %v1517_v45 = vmul.f32 %v1509_v27, %v1453_v35 }
 0x723   :  { %v1495_v25 = vmul.f32 0.7978846, %v1487_v15  ;;  %v1496_v33 = vmul.f32 0.7978846, %v1488_v21  ;;  %v2466_v26 = vpop.eup %2465  ;;  %v1518_v9 = vmul.f32 %v1510_v30, %v1454_v23 }
 0x724   :  { %v1507_v48 = vadd.f32 1.0, %v2466_v26 }
 0x725   :  { %2473 = vtanh.f32 %v1495_v25 }
 0x726   :  { %v2468_v29 = vpop.eup %2467  ;;  %2475 = vtanh.f32 %v1496_v33  ;;  %v1515_v56 = vmul.f32 %v1507_v48, %v1451_v31 }
 0x727   :  { %v2470_v32 = vpop.eup %2469  ;;  %v1513_v37 = vadd.f32 1.0, %v2468_v29 }
 0x728   :  { %v2472_v38 = vpop.eup %2471  ;;  %v1514_v40 = vadd.f32 1.0, %v2470_v32 }
 0x729   :  { %v1521_v46 = vmul.f32 %v1513_v37, %v1457_v36  ;;  %v1508_v53 = vadd.f32 1.0, %v2472_v38 }
 0x72a   :  { %v1522_v1 = vmul.f32 %v1514_v40, %v1458_v39 }
 0x72b   :  { %v2474_v49 = vpop.eup %2473  ;;  %v1525_v2 = vpack.c.bf16 %v1521_v46, %v1517_v45  ;;  %v1516_v57 = vmul.f32 %v1508_v53, %v1452_v55 }
 0x72c   :  { %v2476_v42 = vpop.eup %2475  ;;  %v1526_v54 = vpack.c.bf16 %v1522_v1, %v1518_v9  ;;  %v1511_v0 = vadd.f32 1.0, %v2474_v49 }
 0x72d   :  { %1823 = vmatmul.bf16.vlgmr.msra.gmra.mxu0 %v1525_v2  ;;  %v1512_v52 = vadd.f32 1.0, %v2476_v42 }
 0x72e   :  { %1837 = vmatmul.bf16.vlgmr.msrb.gmra.mxu1 %v1526_v54  ;;  %v1519_v47 = vmul.f32 %v1511_v0, %v1455_v50 }
 0x72f   :  { %v1520_v58 = vmul.f32 %v1512_v52, %v1456_v28 }
 0x730   :  { %v1523_v51 = vpack.c.bf16 %v1519_v47, %v1515_v56 }
 0x731   :  { %v1524_v59 = vpack.c.bf16 %v1520_v58, %v1516_v57 }
 0x732   :  { %1795 = vmatmul.bf16.vlgmr.msra.gmra.mxu2 %v1523_v51 }
 0x733   :  { %1809 = vmatmul.bf16.vlgmr.msrb.gmra.mxu3 %v1524_v59 }
 0x7aa   :  { %v1824_v62 = vpop.f32.mrf.mxu0 }
 0x7ab   :  { %v1838_v43 = vpop.f32.mrf.mxu1 }
 0x7b2   :  { %v1826_v7 = vpop.f32.mrf.mxu0 }
 0x7b3   :  { %v1840_v10 = vpop.f32.mrf.mxu1 }
 0x7b5   :  { %v1796_v12 = vpop.f32.mrf.mxu2 }
 0x7b6   :  { %v1797_v60 = vadd.f32 %v2418_v22, %v1796_v12  ;;  %v1810_v61 = vpop.f32.mrf.mxu3 }
 0x7b8   :  { %v1811_v63 = vadd.f32 %v1810_v61, %v1797_v60 }
 0x7ba   :  { %v1825_v16 = vadd.f32 %v1824_v62, %v1811_v63 }
 0x7bc   :  { %v1839_v34 = vadd.f32 %v1838_v43, %v1825_v16 }
 0x7bd   :  { %v1798_v3 = vpop.f32.mrf.mxu2 }
 0x7be   :  { %v1799_v4 = vadd.f32 %v2418_v22, %v1798_v3  ;;  %v1812_v5 = vpop.f32.mrf.mxu3  ;;  %v1843_v13 = vadd.f32 %v1839_v34, %v3035_v41 }
 0x7c0   :  { %v1813_v6 = vadd.f32 %v1812_v5, %v1799_v4 }
 0x7c2   :  { %v1827_v8 = vadd.f32 %v1826_v7, %v1813_v6 }
 0x7c4   :  { %v1841_v11 = vadd.f32 %v1840_v10, %v1827_v8 }
 0x7c6   :  { %v1844_v14 = vadd.f32 %v1841_v11, %v3039_v44 }
 0x7c8   :  { %v2376_v17 = vpack.c.bf16 %v1844_v14, %v1843_v13 }
 0x7ca   :  { %2377 = vst [vmem:[#allocation19] sm:$0xff] %v2376_v17  }
 0x7cb   :  { %1861 = dma.vmem_to_hbm [thread:$0]  %s1854_s23, 128, %s1856_s24, [#allocation4], %s2762_s18, %s2762_s18, %s2763_s8  }
 0x7cc   :  { %2753 = dma.done.wait [#allocation4], 128  }
 0x7cd   :  { %2754 = vsyncadd [#allocation4], 4294967168 }
 0x7ce   :  { %1866 = vsyncpa [#allocation3], 1 }
 0x7cf   :  { %1867 = vsyncpa [#allocation6], 1 }
 0x7d0   :  { %1868 = vsyncpa [#allocation9], 1 }
 0x7d1   :  { %1869 = vsyncpa [#allocation12], 1 }
 0x7d2   :  { %1870 = vsyncpa [#allocation15], 1 }
 0x7d3   :  { %1871 = vsyncpa [#allocation18], 1 }
 0x7d4   :  { %1872 = vsyncpa [#allocation4], 1 }

</bundles_post_ra>
